<compile_context>
chip_gen: v5e
topology: v5e:2x2
jax: 0.10.0
libtpu: 0.0.40
codegen_flags: <defaults>
</compile_context>

<pallas_src>
import functools

import jax
import jax.numpy as jnp
from jax.experimental import pallas as pl
from jax.experimental.pallas import tpu as pltpu

KH = KW = 3  # 3x3 conv, padding=1


# ----------------------------- fused Pallas kernel ---------------------------

def _branch_kernel(xp_ref, wexp_ref, cbias_ref, selr_ref, fcw_ref, fcb_ref,
                   o_ref, hm_ref, flat_ref):
    # Per grid step (B_TILE batch elements):
    #   xp_ref   : (B_TILE, H+2, W*Cin)     row-padded NHWC input, (x, c) on lanes
    #   wexp_ref : (3, W*Cin, W*Cout)       conv weight expanded over the x window
    #                                       (x-direction zero padding folded in)
    #   cbias_ref: (1, W*Cout)
    #   selr_ref : (2, W*Cout, (W//2)*Cout) even/odd x-column selectors (0/1)
    #   fcw_ref  : ((H//2)*(W//2)*Cout, NCLS_PAD)  FC weight in pooled-flat layout
    #   fcb_ref  : (1, NCLS_PAD)
    #   o_ref    : (B_TILE, NCLS_PAD)
    #   hm_ref   : (B_TILE, H, (W//2)*Cout) scratch, x-pooled conv rows
    #   flat_ref : (B_TILE, (H//2)*(W//2)*Cout) scratch, flattened pooled features
    bt, hp, kin = xp_ref.shape
    h = hp - 2
    npool = selr_ref.shape[2]

    # --- Conv2d(3x3, pad=1) + bias + ReLU: three stacked (B_TILE*H, K) x (K, N)
    # MXU matmuls (M=128), one per ky; kx window folded into the weight.
    acc = jnp.dot(xp_ref[:, 0:h, :].reshape(bt * h, kin), wexp_ref[0],
                  preferred_element_type=jnp.float32)
    for ky in range(1, KH):
        acc = acc + jnp.dot(xp_ref[:, ky:ky + h, :].reshape(bt * h, kin),
                            wexp_ref[ky], preferred_element_type=jnp.float32)
    conv = jnp.maximum(acc + cbias_ref[...], 0.0)           # (B_TILE*H, W*Cout)

    # --- MaxPool2d(2), x direction: even/odd column gather via 0/1 selection
    # matmuls (MXU slot has slack) + elementwise max; stays VMEM-resident.
    hm_ref[...] = jnp.maximum(
        jnp.dot(conv, selr_ref[0], preferred_element_type=jnp.float32),
        jnp.dot(conv, selr_ref[1], preferred_element_type=jnp.float32),
    ).reshape(bt, h, npool)

    # --- MaxPool2d(2), y direction + Flatten: max adjacent rows and write them
    # lane-contiguously into the flat feature scratch (replaces the old
    # selection matmuls AND the per-row FC loop).
    for i in range(h // 2):
        flat_ref[:, i * npool:(i + 1) * npool] = jnp.maximum(
            hm_ref[:, 2 * i, :], hm_ref[:, 2 * i + 1, :])

    # --- Linear: one (B_TILE, 512) x (512, NCLS_PAD=128) matmul, lane-dense out.
    o_ref[...] = (jnp.dot(flat_ref[...], fcw_ref[...],
                          preferred_element_type=jnp.float32) + fcb_ref[...])


# ----------------------------- parameter setup --------------------------------

def prepare_branch_params(params, h, w, ncls_pad=128):
    """One-time rearrangement of torch-layout weights into kernel layouts."""
    conv_w, conv_b, fc_w, fc_b = params          # OIHW, (O,), (out,in), (out,)
    cout, cin, _, _ = conv_w.shape
    ncls = fc_w.shape[0]
    f32 = jnp.float32

    # Conv weight expanded over the kx window (with x-direction zero padding
    # folded in), so the conv becomes 3 matmuls over a W*Cin contraction:
    #   wexp[ky, xin*Cin + c, xout*Cout + co] = conv_w[co, c, ky, xin - xout + 1]
    xin = jnp.arange(w)
    xout = jnp.arange(w)
    wexp_list = []
    for ky in range(KH):
        acc = jnp.zeros((w, cin, w, cout), f32)
        for kx in range(KW):
            mask = (xin[:, None] == xout[None, :] + kx - 1).astype(f32)   # (W, W)
            acc = acc + jnp.einsum('pX,oc->pcXo', mask,
                                   conv_w[:, :, ky, kx].astype(f32))
        wexp_list.append(acc.reshape(w * cin, w * cout))
    wexp = jnp.stack(wexp_list)                                           # (3, 64, 128)

    cbias = jnp.tile(conv_b.astype(f32), w).reshape(1, w * cout)          # (1, 128)

    # Even/odd x-column selectors for the 2x2 max-pool (lane gather as matmul).
    q = jnp.arange(w * cout)[:, None]
    jc = jnp.arange((w // 2) * cout)[None, :]
    j, co = jc // cout, jc % cout
    selr = jnp.stack([q == 2 * j * cout + co,
                      q == (2 * j + 1) * cout + co]).astype(f32)          # (2, 128, 64)

    # FC weight permuted from torch's NCHW-flatten order (c, i, j) to the
    # kernel's pooled-flat layout [i*(W//2)*Cout + j*Cout + c], flattened to a
    # single 2-D matmul operand and zero-padded to NCLS_PAD lanes.
    fcw = fc_w.astype(f32).reshape(ncls, cout, h // 2, w // 2)
    fcw = jnp.transpose(fcw, (2, 3, 1, 0)).reshape((h // 2) * (w // 2) * cout, ncls)
    fcw = jnp.pad(fcw, ((0, 0), (0, ncls_pad - ncls)))
    fcb = jnp.pad(fc_b.astype(f32), (0, ncls_pad - ncls)).reshape(1, ncls_pad)

    return wexp, cbias, selr, fcw, fcb, ncls


# ----------------------------- Branch forward ---------------------------------

def _pick_batch_tile(n):
    # Largest tile <= 8 that divides the batch (B_TILE=8 -> conv M = 128 rows;
    # with N=16 this keeps grid=(2,) so v7x's two TCs each take one step).
    for bt in (8, 4, 2, 1):
        if n % bt == 0:
            return bt
    return 1


@functools.partial(jax.jit, static_argnums=(6,))
def _branch_pallas(x_nchw, wexp, cbias, selr, fcw, fcb, ncls):
    n, cin, h, w = x_nchw.shape
    cout = wexp.shape[2] // w
    npool = (w // 2) * cout
    flatdim = (h // 2) * npool
    ncls_pad = fcb.shape[1]
    bt = _pick_batch_tile(n)

    # NCHW -> NHWC with (x, c) fused on lanes; only the rows (H) are padded —
    # the x-direction padding lives in the pre-expanded conv weight.
    xp = jnp.transpose(x_nchw, (0, 2, 3, 1))
    xp = jnp.pad(xp, ((0, 0), (1, 1), (0, 0), (0, 0)))
    xp = xp.reshape(n, h + 2, w * cin)

    out = pl.pallas_call(
        _branch_kernel,
        out_shape=jax.ShapeDtypeStruct((n, ncls_pad), jnp.float32),
        grid=(n // bt,),
        in_specs=[
            pl.BlockSpec((bt, h + 2, w * cin), lambda b: (b, 0, 0)),
            pl.BlockSpec(wexp.shape, lambda b: (0, 0, 0)),
            pl.BlockSpec(cbias.shape, lambda b: (0, 0)),
            pl.BlockSpec(selr.shape, lambda b: (0, 0, 0)),
            pl.BlockSpec(fcw.shape, lambda b: (0, 0)),
            pl.BlockSpec(fcb.shape, lambda b: (0, 0)),
        ],
        out_specs=pl.BlockSpec((bt, ncls_pad), lambda b: (b, 0)),
        scratch_shapes=[
            pltpu.VMEM((bt, h, npool), jnp.float32),     # x-pooled conv rows
            pltpu.VMEM((bt, flatdim), jnp.float32),      # flattened pooled features
        ],
        compiler_params=pltpu.CompilerParams(
            dimension_semantics=("parallel",)),          # v7x: steps split over 2 TCs
    )(xp, wexp, cbias, selr, fcw, fcb)

    return out[:, :ncls]   # drop the lane-padding on the class dim


def branch_forward(x_nchw, prepared_params):
    """Branch.forward: identity if prepared_params is None, else the branch."""
    if prepared_params is None:      # Branch(None) -> pass-through
        return x_nchw
    wexp, cbias, selr, fcw, fcb, ncls = prepared_params
    return _branch_pallas(x_nchw, wexp, cbias, selr, fcw, fcb, ncls)


# ----------------------------- reference (pure JAX) ----------------------------

def branch_reference(x_nchw, params):
    if params is None:
        return x_nchw
    conv_w, conv_b, fc_w, fc_b = params
    y = jax.lax.conv_general_dilated(
        x_nchw, conv_w, window_strides=(1, 1), padding=((1, 1), (1, 1)),
        dimension_numbers=("NCHW", "OIHW", "NCHW"),
        precision=jax.lax.Precision.HIGHEST)
    y = jax.nn.relu(y + conv_b[None, :, None, None])
    y = jax.lax.reduce_window(y, -jnp.inf, jax.lax.max,
                              (1, 1, 2, 2), (1, 1, 2, 2), "VALID")
    feats = y.reshape(y.shape[0], -1)
    return feats @ fc_w.T + fc_b


# ----------------------------- main --------------------------------------------

if __name__ == "__main__":
    N, CIN, H, W = 16, 4, 16, 16
    COUT, NUM_CLASSES = 8, 10

    key = jax.random.PRNGKey(0)
    kx, kw1, kb1, kw2, kb2 = jax.random.split(key, 5)

    x = jax.random.normal(kx, (N, CIN, H, W), dtype=jnp.float32)

    conv_w = 0.1 * jax.random.normal(kw1, (COUT, CIN, 3, 3), dtype=jnp.float32)
    conv_b = 0.1 * jax.random.normal(kb1, (COUT,), dtype=jnp.float32)
    fc_in = COUT * (H // 2) * (W // 2)
    fc_w = 0.05 * jax.random.normal(kw2, (NUM_CLASSES, fc_in), dtype=jnp.float32)
    fc_b = 0.05 * jax.random.normal(kb2, (NUM_CLASSES,), dtype=jnp.float32)
    params = (conv_w, conv_b, fc_w, fc_b)

    # Branch(None): identity pass-through (no kernel needed).
    out_identity = branch_forward(x, None)
    jax.block_until_ready(out_identity)
    assert out_identity.shape == x.shape

    # Branch([Conv2d, ReLU, MaxPool2d, Flatten, Linear]) via one fused kernel.
    prepared = prepare_branch_params(params, H, W)   # one-time weight layout prep
    out = branch_forward(x, prepared)
    jax.block_until_ready(out)

    ref = branch_reference(x, params)
    jax.block_until_ready(ref)
    assert out.shape == (N, NUM_CLASSES)
    assert jnp.allclose(out, ref, atol=2e-3, rtol=2e-3), "mismatch vs reference"

    print("KERNEL_OK")
</pallas_src>

<mosaic_0001>
module attributes {stable_mosaic.version = 11 : i64} {
  func.func @_branch_kernel(%arg0: i32, %arg1: memref<8x18x64xf32, #tpu.memory_space<vmem>>, %arg2: memref<3x64x128xf32, #tpu.memory_space<vmem>>, %arg3: memref<1x128xf32, #tpu.memory_space<vmem>>, %arg4: memref<2x128x64xf32, #tpu.memory_space<vmem>>, %arg5: memref<512x128xf32, #tpu.memory_space<vmem>>, %arg6: memref<1x128xf32, #tpu.memory_space<vmem>>, %arg7: memref<8x128xf32, #tpu.memory_space<vmem>>, %arg8: memref<8x16x64xf32, #tpu.memory_space<vmem>>, %arg9: memref<8x512xf32, #tpu.memory_space<vmem>>) attributes {dimension_semantics = [#tpu.dimension_semantics<parallel>], iteration_bounds = array<i64: 2>, scalar_prefetch = 0 : i64, scratch_operands = 2 : i64, tpu.core_type = #tpu.core_type<tc>, window_params = [{transform_indices = @transform_0, window_bounds = array<i64: 8, 18, 64>}, {pipeline_mode = #tpu.pipeline_mode<synchronous>, transform_indices = @transform_1, window_bounds = array<i64: 3, 64, 128>}, {pipeline_mode = #tpu.pipeline_mode<synchronous>, transform_indices = @transform_2, window_bounds = array<i64: 1, 128>}, {pipeline_mode = #tpu.pipeline_mode<synchronous>, transform_indices = @transform_3, window_bounds = array<i64: 2, 128, 64>}, {pipeline_mode = #tpu.pipeline_mode<synchronous>, transform_indices = @transform_4, window_bounds = array<i64: 512, 128>}, {pipeline_mode = #tpu.pipeline_mode<synchronous>, transform_indices = @transform_5, window_bounds = array<i64: 1, 128>}, {transform_indices = @transform_6, window_bounds = array<i64: 8, 128>}]} {
    %c0 = arith.constant 0 : index
    %c0_0 = arith.constant 0 : index
    %c0_1 = arith.constant 0 : index
    %0 = vector.load %arg1[%c0, %c0_0, %c0_1] : memref<8x18x64xf32, #tpu.memory_space<vmem>>, vector<8x16x64xf32>
    %1 = vector.shape_cast %0 : vector<8x16x64xf32> to vector<128x64xf32>
    %c0_2 = arith.constant 0 : index
    %c0_3 = arith.constant 0 : index
    %c0_4 = arith.constant 0 : index
    %2 = vector.load %arg2[%c0_2, %c0_3, %c0_4] : memref<3x64x128xf32, #tpu.memory_space<vmem>>, vector<1x64x128xf32>
    %3 = vector.shape_cast %2 : vector<1x64x128xf32> to vector<64x128xf32>
    %cst = arith.constant dense<0.000000e+00> : vector<128x128xf32>
    %4 = tpu.matmul %1, %3, %cst {dimension_numbers = #tpu.dot_dimension_numbers<[1], [0], [0], [1], [0, 0, 1, 1], [], []>} : vector<128x64xf32>, vector<64x128xf32>, vector<128x128xf32> -> vector<128x128xf32>
    %c0_5 = arith.constant 0 : index
    %c1 = arith.constant 1 : index
    %c0_6 = arith.constant 0 : index
    %5 = vector.load %arg1[%c0_5, %c1, %c0_6] : memref<8x18x64xf32, #tpu.memory_space<vmem>>, vector<8x16x64xf32>
    %6 = vector.shape_cast %5 : vector<8x16x64xf32> to vector<128x64xf32>
    %c1_7 = arith.constant 1 : index
    %c0_8 = arith.constant 0 : index
    %c0_9 = arith.constant 0 : index
    %7 = vector.load %arg2[%c1_7, %c0_8, %c0_9] : memref<3x64x128xf32, #tpu.memory_space<vmem>>, vector<1x64x128xf32>
    %8 = vector.shape_cast %7 : vector<1x64x128xf32> to vector<64x128xf32>
    %cst_10 = arith.constant dense<0.000000e+00> : vector<128x128xf32>
    %9 = tpu.matmul %6, %8, %cst_10 {dimension_numbers = #tpu.dot_dimension_numbers<[1], [0], [0], [1], [0, 0, 1, 1], [], []>} : vector<128x64xf32>, vector<64x128xf32>, vector<128x128xf32> -> vector<128x128xf32>
    %10 = arith.addf %4, %9 : vector<128x128xf32>
    %c0_11 = arith.constant 0 : index
    %c2 = arith.constant 2 : index
    %c0_12 = arith.constant 0 : index
    %11 = vector.load %arg1[%c0_11, %c2, %c0_12] : memref<8x18x64xf32, #tpu.memory_space<vmem>>, vector<8x16x64xf32>
    %12 = vector.shape_cast %11 : vector<8x16x64xf32> to vector<128x64xf32>
    %c2_13 = arith.constant 2 : index
    %c0_14 = arith.constant 0 : index
    %c0_15 = arith.constant 0 : index
    %13 = vector.load %arg2[%c2_13, %c0_14, %c0_15] : memref<3x64x128xf32, #tpu.memory_space<vmem>>, vector<1x64x128xf32>
    %14 = vector.shape_cast %13 : vector<1x64x128xf32> to vector<64x128xf32>
    %cst_16 = arith.constant dense<0.000000e+00> : vector<128x128xf32>
    %15 = tpu.matmul %12, %14, %cst_16 {dimension_numbers = #tpu.dot_dimension_numbers<[1], [0], [0], [1], [0, 0, 1, 1], [], []>} : vector<128x64xf32>, vector<64x128xf32>, vector<128x128xf32> -> vector<128x128xf32>
    %16 = arith.addf %10, %15 : vector<128x128xf32>
    %c0_17 = arith.constant 0 : index
    %c0_18 = arith.constant 0 : index
    %17 = vector.load %arg3[%c0_17, %c0_18] : memref<1x128xf32, #tpu.memory_space<vmem>>, vector<1x128xf32>
    %18 = vector.broadcast %17 : vector<1x128xf32> to vector<128x128xf32>
    %19 = arith.addf %16, %18 : vector<128x128xf32>
    %cst_19 = arith.constant 0.000000e+00 : f32
    %20 = vector.broadcast %cst_19 : f32 to vector<128x128xf32>
    %21 = arith.maximumf %19, %20 : vector<128x128xf32>
    %c0_20 = arith.constant 0 : index
    %c0_21 = arith.constant 0 : index
    %c0_22 = arith.constant 0 : index
    %22 = vector.load %arg4[%c0_20, %c0_21, %c0_22] : memref<2x128x64xf32, #tpu.memory_space<vmem>>, vector<1x128x64xf32>
    %23 = vector.shape_cast %22 : vector<1x128x64xf32> to vector<128x64xf32>
    %cst_23 = arith.constant dense<0.000000e+00> : vector<128x64xf32>
    %24 = tpu.matmul %21, %23, %cst_23 {dimension_numbers = #tpu.dot_dimension_numbers<[1], [0], [0], [1], [0, 0, 1, 1], [], []>} : vector<128x128xf32>, vector<128x64xf32>, vector<128x64xf32> -> vector<128x64xf32>
    %c1_24 = arith.constant 1 : index
    %c0_25 = arith.constant 0 : index
    %c0_26 = arith.constant 0 : index
    %25 = vector.load %arg4[%c1_24, %c0_25, %c0_26] : memref<2x128x64xf32, #tpu.memory_space<vmem>>, vector<1x128x64xf32>
    %26 = vector.shape_cast %25 : vector<1x128x64xf32> to vector<128x64xf32>
    %cst_27 = arith.constant dense<0.000000e+00> : vector<128x64xf32>
    %27 = tpu.matmul %21, %26, %cst_27 {dimension_numbers = #tpu.dot_dimension_numbers<[1], [0], [0], [1], [0, 0, 1, 1], [], []>} : vector<128x128xf32>, vector<128x64xf32>, vector<128x64xf32> -> vector<128x64xf32>
    %28 = arith.maximumf %24, %27 : vector<128x64xf32>
    %29 = vector.shape_cast %28 : vector<128x64xf32> to vector<8x16x64xf32>
    %c0_28 = arith.constant 0 : index
    %c0_29 = arith.constant 0 : index
    %c0_30 = arith.constant 0 : index
    %30 = vector.load %arg8[%c0_28, %c0_29, %c0_30] : memref<8x16x64xf32, #tpu.memory_space<vmem>>, vector<8x16x64xf32>
    tpu.vector_store %arg8[%c0_28, %c0_29, %c0_30], %29 {strides = array<i32>} : memref<8x16x64xf32, #tpu.memory_space<vmem>>, vector<8x16x64xf32>,
    %c0_31 = arith.constant 0 : index
    %c0_32 = arith.constant 0 : index
    %c0_33 = arith.constant 0 : index
    %31 = vector.load %arg8[%c0_31, %c0_32, %c0_33] : memref<8x16x64xf32, #tpu.memory_space<vmem>>, vector<8x1x64xf32>
    %32 = vector.shape_cast %31 : vector<8x1x64xf32> to vector<8x64xf32>
    %c0_34 = arith.constant 0 : index
    %c1_35 = arith.constant 1 : index
    %c0_36 = arith.constant 0 : index
    %33 = vector.load %arg8[%c0_34, %c1_35, %c0_36] : memref<8x16x64xf32, #tpu.memory_space<vmem>>, vector<8x1x64xf32>
    %34 = vector.shape_cast %33 : vector<8x1x64xf32> to vector<8x64xf32>
    %35 = arith.maximumf %32, %34 : vector<8x64xf32>
    %c0_37 = arith.constant 0 : index
    %c0_38 = arith.constant 0 : index
    %36 = vector.load %arg9[%c0_37, %c0_38] : memref<8x512xf32, #tpu.memory_space<vmem>>, vector<8x64xf32>
    tpu.vector_store %arg9[%c0_37, %c0_38], %35 {strides = array<i32>} : memref<8x512xf32, #tpu.memory_space<vmem>>, vector<8x64xf32>,
    %c0_39 = arith.constant 0 : index
    %c2_40 = arith.constant 2 : index
    %c0_41 = arith.constant 0 : index
    %37 = vector.load %arg8[%c0_39, %c2_40, %c0_41] : memref<8x16x64xf32, #tpu.memory_space<vmem>>, vector<8x1x64xf32>
    %38 = vector.shape_cast %37 : vector<8x1x64xf32> to vector<8x64xf32>
    %c0_42 = arith.constant 0 : index
    %c3 = arith.constant 3 : index
    %c0_43 = arith.constant 0 : index
    %39 = vector.load %arg8[%c0_42, %c3, %c0_43] : memref<8x16x64xf32, #tpu.memory_space<vmem>>, vector<8x1x64xf32>
    %40 = vector.shape_cast %39 : vector<8x1x64xf32> to vector<8x64xf32>
    %41 = arith.maximumf %38, %40 : vector<8x64xf32>
    %c0_44 = arith.constant 0 : index
    %c64 = arith.constant 64 : index
    %42 = vector.load %arg9[%c0_44, %c64] : memref<8x512xf32, #tpu.memory_space<vmem>>, vector<8x64xf32>
    tpu.vector_store %arg9[%c0_44, %c64], %41 {strides = array<i32>} : memref<8x512xf32, #tpu.memory_space<vmem>>, vector<8x64xf32>,
    %c0_45 = arith.constant 0 : index
    %c4 = arith.constant 4 : index
    %c0_46 = arith.constant 0 : index
    %43 = vector.load %arg8[%c0_45, %c4, %c0_46] : memref<8x16x64xf32, #tpu.memory_space<vmem>>, vector<8x1x64xf32>
    %44 = vector.shape_cast %43 : vector<8x1x64xf32> to vector<8x64xf32>
    %c0_47 = arith.constant 0 : index
    %c5 = arith.constant 5 : index
    %c0_48 = arith.constant 0 : index
    %45 = vector.load %arg8[%c0_47, %c5, %c0_48] : memref<8x16x64xf32, #tpu.memory_space<vmem>>, vector<8x1x64xf32>
    %46 = vector.shape_cast %45 : vector<8x1x64xf32> to vector<8x64xf32>
    %47 = arith.maximumf %44, %46 : vector<8x64xf32>
    %c0_49 = arith.constant 0 : index
    %c128 = arith.constant 128 : index
    %48 = vector.load %arg9[%c0_49, %c128] : memref<8x512xf32, #tpu.memory_space<vmem>>, vector<8x64xf32>
    tpu.vector_store %arg9[%c0_49, %c128], %47 {strides = array<i32>} : memref<8x512xf32, #tpu.memory_space<vmem>>, vector<8x64xf32>,
    %c0_50 = arith.constant 0 : index
    %c6 = arith.constant 6 : index
    %c0_51 = arith.constant 0 : index
    %49 = vector.load %arg8[%c0_50, %c6, %c0_51] : memref<8x16x64xf32, #tpu.memory_space<vmem>>, vector<8x1x64xf32>
    %50 = vector.shape_cast %49 : vector<8x1x64xf32> to vector<8x64xf32>
    %c0_52 = arith.constant 0 : index
    %c7 = arith.constant 7 : index
    %c0_53 = arith.constant 0 : index
    %51 = vector.load %arg8[%c0_52, %c7, %c0_53] : memref<8x16x64xf32, #tpu.memory_space<vmem>>, vector<8x1x64xf32>
    %52 = vector.shape_cast %51 : vector<8x1x64xf32> to vector<8x64xf32>
    %53 = arith.maximumf %50, %52 : vector<8x64xf32>
    %c0_54 = arith.constant 0 : index
    %c192 = arith.constant 192 : index
    %54 = vector.load %arg9[%c0_54, %c192] : memref<8x512xf32, #tpu.memory_space<vmem>>, vector<8x64xf32>
    tpu.vector_store %arg9[%c0_54, %c192], %53 {strides = array<i32>} : memref<8x512xf32, #tpu.memory_space<vmem>>, vector<8x64xf32>,
    %c0_55 = arith.constant 0 : index
    %c8 = arith.constant 8 : index
    %c0_56 = arith.constant 0 : index
    %55 = vector.load %arg8[%c0_55, %c8, %c0_56] : memref<8x16x64xf32, #tpu.memory_space<vmem>>, vector<8x1x64xf32>
    %56 = vector.shape_cast %55 : vector<8x1x64xf32> to vector<8x64xf32>
    %c0_57 = arith.constant 0 : index
    %c9 = arith.constant 9 : index
    %c0_58 = arith.constant 0 : index
    %57 = vector.load %arg8[%c0_57, %c9, %c0_58] : memref<8x16x64xf32, #tpu.memory_space<vmem>>, vector<8x1x64xf32>
    %58 = vector.shape_cast %57 : vector<8x1x64xf32> to vector<8x64xf32>
    %59 = arith.maximumf %56, %58 : vector<8x64xf32>
    %c0_59 = arith.constant 0 : index
    %c256 = arith.constant 256 : index
    %60 = vector.load %arg9[%c0_59, %c256] : memref<8x512xf32, #tpu.memory_space<vmem>>, vector<8x64xf32>
    tpu.vector_store %arg9[%c0_59, %c256], %59 {strides = array<i32>} : memref<8x512xf32, #tpu.memory_space<vmem>>, vector<8x64xf32>,
    %c0_60 = arith.constant 0 : index
    %c10 = arith.constant 10 : index
    %c0_61 = arith.constant 0 : index
    %61 = vector.load %arg8[%c0_60, %c10, %c0_61] : memref<8x16x64xf32, #tpu.memory_space<vmem>>, vector<8x1x64xf32>
    %62 = vector.shape_cast %61 : vector<8x1x64xf32> to vector<8x64xf32>
    %c0_62 = arith.constant 0 : index
    %c11 = arith.constant 11 : index
    %c0_63 = arith.constant 0 : index
    %63 = vector.load %arg8[%c0_62, %c11, %c0_63] : memref<8x16x64xf32, #tpu.memory_space<vmem>>, vector<8x1x64xf32>
    %64 = vector.shape_cast %63 : vector<8x1x64xf32> to vector<8x64xf32>
    %65 = arith.maximumf %62, %64 : vector<8x64xf32>
    %c0_64 = arith.constant 0 : index
    %c320 = arith.constant 320 : index
    %66 = vector.load %arg9[%c0_64, %c320] : memref<8x512xf32, #tpu.memory_space<vmem>>, vector<8x64xf32>
    tpu.vector_store %arg9[%c0_64, %c320], %65 {strides = array<i32>} : memref<8x512xf32, #tpu.memory_space<vmem>>, vector<8x64xf32>,
    %c0_65 = arith.constant 0 : index
    %c12 = arith.constant 12 : index
    %c0_66 = arith.constant 0 : index
    %67 = vector.load %arg8[%c0_65, %c12, %c0_66] : memref<8x16x64xf32, #tpu.memory_space<vmem>>, vector<8x1x64xf32>
    %68 = vector.shape_cast %67 : vector<8x1x64xf32> to vector<8x64xf32>
    %c0_67 = arith.constant 0 : index
    %c13 = arith.constant 13 : index
    %c0_68 = arith.constant 0 : index
    %69 = vector.load %arg8[%c0_67, %c13, %c0_68] : memref<8x16x64xf32, #tpu.memory_space<vmem>>, vector<8x1x64xf32>
    %70 = vector.shape_cast %69 : vector<8x1x64xf32> to vector<8x64xf32>
    %71 = arith.maximumf %68, %70 : vector<8x64xf32>
    %c0_69 = arith.constant 0 : index
    %c384 = arith.constant 384 : index
    %72 = vector.load %arg9[%c0_69, %c384] : memref<8x512xf32, #tpu.memory_space<vmem>>, vector<8x64xf32>
    tpu.vector_store %arg9[%c0_69, %c384], %71 {strides = array<i32>} : memref<8x512xf32, #tpu.memory_space<vmem>>, vector<8x64xf32>,
    %c0_70 = arith.constant 0 : index
    %c14 = arith.constant 14 : index
    %c0_71 = arith.constant 0 : index
    %73 = vector.load %arg8[%c0_70, %c14, %c0_71] : memref<8x16x64xf32, #tpu.memory_space<vmem>>, vector<8x1x64xf32>
    %74 = vector.shape_cast %73 : vector<8x1x64xf32> to vector<8x64xf32>
    %c0_72 = arith.constant 0 : index
    %c15 = arith.constant 15 : index
    %c0_73 = arith.constant 0 : index
    %75 = vector.load %arg8[%c0_72, %c15, %c0_73] : memref<8x16x64xf32, #tpu.memory_space<vmem>>, vector<8x1x64xf32>
    %76 = vector.shape_cast %75 : vector<8x1x64xf32> to vector<8x64xf32>
    %77 = arith.maximumf %74, %76 : vector<8x64xf32>
    %c0_74 = arith.constant 0 : index
    %c448 = arith.constant 448 : index
    %78 = vector.load %arg9[%c0_74, %c448] : memref<8x512xf32, #tpu.memory_space<vmem>>, vector<8x64xf32>
    tpu.vector_store %arg9[%c0_74, %c448], %77 {strides = array<i32>} : memref<8x512xf32, #tpu.memory_space<vmem>>, vector<8x64xf32>,
    %c0_75 = arith.constant 0 : index
    %c0_76 = arith.constant 0 : index
    %79 = vector.load %arg9[%c0_75, %c0_76] : memref<8x512xf32, #tpu.memory_space<vmem>>, vector<8x512xf32>
    %c0_77 = arith.constant 0 : index
    %c0_78 = arith.constant 0 : index
    %80 = vector.load %arg5[%c0_77, %c0_78] : memref<512x128xf32, #tpu.memory_space<vmem>>, vector<512x128xf32>
    %cst_79 = arith.constant dense<0.000000e+00> : vector<8x128xf32>
    %81 = tpu.matmul %79, %80, %cst_79 {dimension_numbers = #tpu.dot_dimension_numbers<[1], [0], [0], [1], [0, 0, 1, 1], [], []>} : vector<8x512xf32>, vector<512x128xf32>, vector<8x128xf32> -> vector<8x128xf32>
    %c0_80 = arith.constant 0 : index
    %c0_81 = arith.constant 0 : index
    %82 = vector.load %arg6[%c0_80, %c0_81] : memref<1x128xf32, #tpu.memory_space<vmem>>, vector<1x128xf32>
    %83 = vector.broadcast %82 : vector<1x128xf32> to vector<8x128xf32>
    %84 = arith.addf %81, %83 : vector<8x128xf32>
    %c0_82 = arith.constant 0 : index
    %c0_83 = arith.constant 0 : index
    %85 = vector.load %arg7[%c0_82, %c0_83] : memref<8x128xf32, #tpu.memory_space<vmem>>, vector<8x128xf32>
    tpu.vector_store %arg7[%c0_82, %c0_83], %84 {strides = array<i32>} : memref<8x128xf32, #tpu.memory_space<vmem>>, vector<8x128xf32>,
    return
  }
  func.func @transform_0(%arg0: i32) -> (i32, i32, i32) {
    %c0_i32 = arith.constant 0 : i32
    %c0_i32_0 = arith.constant 0 : i32
    %c0_i32_1 = arith.constant 0 : i32
    return %arg0, %c0_i32, %c0_i32_0 : i32, i32, i32
  }
  func.func @transform_1(%arg0: i32) -> (i32, i32, i32) {
    %c0_i32 = arith.constant 0 : i32
    %c0_i32_0 = arith.constant 0 : i32
    %c0_i32_1 = arith.constant 0 : i32
    %c0_i32_2 = arith.constant 0 : i32
    return %c0_i32, %c0_i32_0, %c0_i32_1 : i32, i32, i32
  }
  func.func @transform_2(%arg0: i32) -> (i32, i32) {
    %c0_i32 = arith.constant 0 : i32
    %c0_i32_0 = arith.constant 0 : i32
    %c0_i32_1 = arith.constant 0 : i32
    return %c0_i32, %c0_i32_0 : i32, i32
  }
  func.func @transform_3(%arg0: i32) -> (i32, i32, i32) {
    %c0_i32 = arith.constant 0 : i32
    %c0_i32_0 = arith.constant 0 : i32
    %c0_i32_1 = arith.constant 0 : i32
    %c0_i32_2 = arith.constant 0 : i32
    return %c0_i32, %c0_i32_0, %c0_i32_1 : i32, i32, i32
  }
  func.func @transform_4(%arg0: i32) -> (i32, i32) {
    %c0_i32 = arith.constant 0 : i32
    %c0_i32_0 = arith.constant 0 : i32
    %c0_i32_1 = arith.constant 0 : i32
    return %c0_i32, %c0_i32_0 : i32, i32
  }
  func.func @transform_5(%arg0: i32) -> (i32, i32) {
    %c0_i32 = arith.constant 0 : i32
    %c0_i32_0 = arith.constant 0 : i32
    %c0_i32_1 = arith.constant 0 : i32
    return %c0_i32, %c0_i32_0 : i32, i32
  }
  func.func @transform_6(%arg0: i32) -> (i32, i32) {
    %c0_i32 = arith.constant 0 : i32
    %c0_i32_0 = arith.constant 0 : i32
    return %arg0, %c0_i32 : i32, i32
  }
}

</mosaic_0001>

<bundles_post_ra>
// kernel: _branch_pallas.1
= control target key start
LH: loop header
LB: loop body
LE: loop exit
PB: predicated region body
PF: predicated region fallthrough
CT: control target
= control target key end

     0   :  { %11 = vsyncpa [#allocation5], 0  ;;  %s2833_s0 = inlined_call_operand.vmem [shape: f32[16,18,64], index: 0, kind: input, shape index: {}]   ;;  %s2834_s1 = inlined_call_operand.vmem [shape: f32[3,64,128], index: 1, kind: input, shape index: {}]   ;;  %s2835_s2 = inlined_call_operand.vmem [shape: f32[1,128], index: 2, kind: input, shape index: {}]   ;;  %s2836_s3 = inlined_call_operand.vmem [shape: f32[2,128,64], index: 3, kind: input, shape index: {}]   ;;  %s2837_s4 = inlined_call_operand.vmem [shape: f32[512,128], index: 4, kind: input, shape index: {}]   ;;  %s2838_s5 = inlined_call_operand.vmem [shape: f32[1,128], index: 5, kind: input, shape index: {}]   ;;  %s2839_s6 = inlined_call_operand.hbm [shape: f32[16,128], index: 6, kind: output, shape index: {}]  }
   0x1   :  { %13 = vsyncpa [#allocation5 + $0x1], 0  ;;  %s1794_s21 = smov 0   ;;  %s1796_s22 = smov 0  }
   0x2   :  { %s1798_s23 = smov 0   ;;  %s1800_s24 = smov 0  }
   0x3 LB: > { %s1543_s25 = sadd.s32 4294967295, %s1756_s24   ;;  %s1544_s26 = sadd.s32 4294967294, %s1756_s24   ;;  %s1756_s24 = sphi %s1800_s24, %s2845_s24   ;;  %s1752_s23 = sphi %s1798_s23, %s2844_s23   ;;  %s1748_s22 = sphi %s1796_s22, %s2843_s22   ;;  %s1744_s21 = sphi %s1794_s21, %s2842_s21  }
   0x4   : > { %s1817_s27 = sadd.s32 1, %s1756_s24   ;;  %s157_s28 = sadd.s32 1, %s1752_s23 }
   0x5   : > { %s154_s29 = ssub.s32 %s1756_s24, %s1817_s27  ;;  %p167_p0 = scmp.ne.s32.totalorder %s1752_s23, %s1748_s22 }
   0x6   : > { %p155_p1 = scmp.eq.s32.totalorder %s154_s29, 0  ;;  %p168_p2 = scmp.eq.s32.totalorder %s1543_s25, 1 }
   0x7   : > { %p173_p3 = scmp.ne.s32.totalorder %s1748_s22, %s1744_s21  ;;  %p174_p4 = scmp.eq.s32.totalorder %s1544_s26, 1 }
   0x8   : > { %s1827_s30 = scalar_select %p155_p1, %s1752_s23, %s157_s28  }
   0x9   : > { %p1829_p5 = por %p168_p2, %p167_p0  ;;  %p1833_p6 = por %p174_p4, %p173_p3 }
   0xa   : > { %p1547_p7 = scmp.ge.s32.totalorder %s1756_s24, 1  ;;  %p217_p8 = scmp.lt.s32.totalorder %s1756_s24, 3 }
   0xc   : > { %p218_p9 = pnand %p1547_p7, %p217_p8 }
   0xd   : > { %s1848_s15 = sshll.u32 (!%p218_p9), %s1543_s25, 3  ;;  %s1758_s29 = smov (!%p218_p9), 64  }
   0xe   : > { %221 = sbr.rel (%p218_p9) target bundleno = 743 (0x2e7), region = 44  ;;  %p249_p10 = scmp.lt.s32.totalorder (!%p218_p9), %s1848_s15, 15 }
   0xf   : > { %s245_s12 = sand.u32 (!%p218_p9), 1, %s1748_s22   ;;  %s1480_s17 = scalar_lea.hbm (!%p218_p9), %s2839_s6, %s1848_s15 }
  0x10   : > { %s1548_s13 = sshll.u32 (!%p218_p9), %s245_s12, 3  ;;  %s1484_s18 = sshll.u32 (!%p218_p9), %s1480_s17, 4  ;;  %s1485_s18 = int_to_ptr.hbm [resolvable:$true] %s1484_s18 }
  0x11   : > { %s1470_s19 = scalar_lea.sflag (!%p218_p9), [#allocation5], %s245_s12  ;;  %s1708_s20 = sshra.s32 (!%p218_p9), %s1485_s18, 4  ;;  %s1709_s20 = int_to_ptr.hbm [resolvable:$true] %s1708_s20 }
  0x12   : > { %s1710_s26 = scalar_lea.hbm (!%p218_p9), %s1709_s20, 8  ;;  %p1715_p0 = scmp.lt.s32.totalorder (!%p218_p9), %s1709_s20, %s2839_s6 }
  0x13   : > { %v1558_v0 = vld [vmem:[%s2834_s1 + $0x78] sm:$0xff]  ;;  %v1557_v2 = vld [vmem:[%s2834_s1 + $0x70] sm:$0xff]  ;;  %v1556_v4 = vld [vmem:[%s2834_s1 + $0x68] sm:$0xff]  ;;  %s250_s25 = scalar_select %p249_p10, %s1848_s15, 15  ;;  %vm304_vm0 = vcmask 523264   ;;  %vm949_vm1 = vcmask 1041409  }
  0x14   : > { %v278_v1 = vld [vmem:[%s2834_s1 + $0x38] sm:$0xff]  ;;  %1635 = vmatpush.msra.mxu2 %v1558_v0  ;;  %v277_v3 = vld [vmem:[%s2834_s1 + $0x30] sm:$0xff]  ;;  %v276_v5 = vld [vmem:[%s2834_s1 + $0x28] sm:$0xff]  ;;  %361 = vmatpush.msra.mxu0 %v1558_v0  ;;  %vm952_vm2 = vcmask 1042434   ;;  %vm955_vm3 = vcmask 1043459   ;;  %vm958_vm4 = vcmask 1044484   ;;  %p1711_p11 = scmp.ne.s32.totalorder %s1709_s20, %s1710_s26 }
  0x15   : > { %474 = vmatpush.msra.mxu1 %v278_v1  ;;  %1636 = vmatpush.msra.mxu3 %v1558_v0  ;;  %v1555_v6 = vld [vmem:[%s2834_s1 + $0x60] sm:$0xff]  ;;  %v1554_v8 = vld [vmem:[%s2834_s1 + $0x58] sm:$0xff]  ;;  %s1651_s16 = smul.u32 24, %s250_s25  ;;  %v1553_v10 = vld [vmem:[%s2834_s1 + $0x50] sm:$0xff]  ;;  %vm961_vm5 = vcmask 1045509   ;;  %vm964_vm6 = vcmask 1046534  }
  0x16   : > { %1637 = vmatpush.msra.mxu2 %v1557_v2  ;;  %v275_v7 = vld [vmem:[%s2834_s1 + $0x20] sm:$0xff]  ;;  %362 = vmatpush.msra.mxu0 %v1557_v2  ;;  %v274_v9 = vld [vmem:[%s2834_s1 + $0x18] sm:$0xff]  ;;  %v273_v11 = vld [vmem:[%s2834_s1 + $0x10] sm:$0xff]  ;;  %vm967_vm7 = vcmask 1047559   ;;  %vm1020_vm8 = vcmask 1048064   ;;  %p1712_p12 = pnand %p1711_p11, %p1829_p5  ;;  %s1714_s25 = scalar_lea.hbm %s2839_s6, 16 }
  0x17   : > { %475 = vmatpush.msra.mxu1 %v277_v3  ;;  %1638 = vmatpush.msra.mxu3 %v1557_v2  ;;  %v1552_v12 = vld [vmem:[%s2834_s1 + $0x48] sm:$0xff]  ;;  %s1888_s11 = scalar_lea.vmem %s2833_s0, %s1651_s16  ;;  %v1551_v14 = vld [vmem:[%s2834_s1 + $0x40] sm:$0xff]  ;;  %v1598_v18 = vld [vmem:[%s2834_s1 + $0xb8] sm:$0xff]  ;;  %s247_s16 = scalar_lea.vmem [#allocation4], %s1548_s13 }
  0x18   : > { %1639 = vmatpush.msra.mxu2 %v1556_v4  ;;  %363 = vmatpush.msra.mxu0 %v1556_v4  ;;  %v272_v13 = vld [vmem:[%s2834_s1 + $0x8] sm:$0xff]  ;;  %v271_v15 = vld [vmem:[%s2834_s1] sm:$0xff]  ;;  %v286_v16 = vld [vmem:[%s1888_s11 + $0x51] sm:$0xff]  ;;  %p1713_p13 = pneg %p1712_p12  ;;  %p1716_p1 = scmp.lt.s32.totalorder %s1714_s25, %s1710_s26 }
  0x19   : > { %476 = vmatpush.msra.mxu1 %v276_v5  ;;  %1640 = vmatpush.msra.mxu3 %v1556_v4  ;;  %v255_v17 = vld [vmem:[%s1888_s11] sm:$0xff]  ;;  %v1597_v19 = vld [vmem:[%s2834_s1 + $0xb0] sm:$0xff]  ;;  %v1596_v20 = vld [vmem:[%s2834_s1 + $0xa8] sm:$0xff] }
  0x1a   : > { %1641 = vmatpush.msra.mxu2 %v1555_v6  ;;  %364 = vmatpush.msra.mxu0 %v1555_v6  ;;  %v1595_v21 = vld [vmem:[%s2834_s1 + $0xa0] sm:$0xff]  ;;  %v256_v23 = vld [vmem:[%s1888_s11 + $0x8] sm:$0xff]  ;;  %v1594_v24 = vld [vmem:[%s2834_s1 + $0x98] sm:$0xff]  ;;  %p1717_p2 = por %p1716_p1, %p1715_p0 }
  0x1b   : > { %477 = vmatpush.msra.mxu1 %v275_v7  ;;  %1642 = vmatpush.msra.mxu3 %v1555_v6  ;;  %v287_v22 = vld [vmem:[%s1888_s11 + $0x61] sm:$0xff]  ;;  %v1593_v25 = vld [vmem:[%s2834_s1 + $0x90] sm:$0xff]  ;;  %v257_v30 = vld [vmem:[%s1888_s11 + $0x18] sm:$0xff] }
  0x1c   : > { %1643 = vmatpush.msra.mxu2 %v1554_v8  ;;  %365 = vmatpush.msra.mxu0 %v1554_v8  ;;  %v279_v26 = vld [vmem:[%s1888_s11 + $0x1] sm:$0xff]  ;;  %v288_v29 = vld [vmem:[%s1888_s11 + $0x69] sm:$0xff]  ;;  %v289_v32 = vld [vmem:[%s1888_s11 + $0x79] sm:$0xff]  ;;  %p1718_p3 = pnand %p1717_p2, %p1713_p13 }
  0x1d   : > { %478 = vmatpush.msra.mxu1 %v274_v9  ;;  %1644 = vmatpush.msra.mxu3 %v1554_v8  ;;  %v1592_v27 = vld [vmem:[%s2834_s1 + $0x88] sm:$0xff]  ;;  %v1591_v28 = vld [vmem:[%s2834_s1 + $0x80] sm:$0xff]  ;;  %v259_v36 = vld [vmem:[%s1888_s11 + $0x30] sm:$0xff] }
  0x1e   : > { %1645 = vmatpush.msra.mxu2 %v1553_v10  ;;  %366 = vmatpush.msra.mxu0 %v1553_v10  ;;  %v280_v31 = vld [vmem:[%s1888_s11 + $0x9] sm:$0xff]  ;;  %v258_v33 = vld [vmem:[%s1888_s11 + $0x20] sm:$0xff]  ;;  %v260_v38 = vld [vmem:[%s1888_s11 + $0x38] sm:$0xff] }
  0x1f   : > { %479 = vmatpush.msra.mxu1 %v273_v11  ;;  %1646 = vmatpush.msra.mxu3 %v1553_v10  ;;  %v281_v34 = vld [vmem:[%s1888_s11 + $0x19] sm:$0xff]  ;;  %v290_v35 = vld [vmem:[%s1888_s11 + $0x81] sm:$0xff]  ;;  %v283_v40 = vld [vmem:[%s1888_s11 + $0x31] sm:$0xff] }
  0x20   : > { %1647 = vmatpush.msra.mxu2 %v1552_v12  ;;  %367 = vmatpush.msra.mxu0 %v1552_v12  ;;  %v282_v37 = vld [vmem:[%s1888_s11 + $0x21] sm:$0xff]  ;;  %v532_v42 = vld [vmem:[%s1888_s11 + $0xa] sm:$0xff]  ;;  %v284_v43 = vld [vmem:[%s1888_s11 + $0x39] sm:$0xff] }
  0x21   : > { %480 = vmatpush.msra.mxu1 %v272_v13  ;;  %1648 = vmatpush.msra.mxu3 %v1552_v12  ;;  %v531_v39 = vld [vmem:[%s1888_s11 + $0x2] sm:$0xff]  ;;  %v262_v44 = vld [vmem:[%s1888_s11 + $0x50] sm:$0xff]  ;;  %v533_v45 = vld [vmem:[%s1888_s11 + $0x1a] sm:$0xff] }
  0x22   : > { %1649 = vmatpush.msra.mxu2 %v1551_v14  ;;  %368 = vmatpush.msra.mxu0 %v1551_v14  ;;  %v261_v41 = vld [vmem:[%s1888_s11 + $0x48] sm:$0xff]  ;;  %v263_v47 = vld [vmem:[%s1888_s11 + $0x60] sm:$0xff]  ;;  %v535_v50 = vld [vmem:[%s1888_s11 + $0x32] sm:$0xff] }
  0x23   : > { %481 = vmatpush.msra.mxu1 %v271_v15  ;;  %1566 = vmatmul.msk.f32.vlgmr.msra.gmra.mxu2 %vm304_vm0, %v286_v16  ;;  %v285_v46 = vld [vmem:[%s1888_s11 + $0x49] sm:$0xff]  ;;  %v265_v51 = vld [vmem:[%s1888_s11 + $0x78] sm:$0xff]  ;;  %v266_v53 = vld [vmem:[%s1888_s11 + $0x80] sm:$0xff] }
  0x24   : > { %1575 = vmatmul.msk.f32.vlgmr.msra.gmra.mxu1 %vm304_vm0, %v255_v17  ;;  %612 = vmatpush.msrb.mxu2 %v1598_v18  ;;  %v534_v48 = vld [vmem:[%s1888_s11 + $0x22] sm:$0xff]  ;;  %v536_v52 = vld [vmem:[%s1888_s11 + $0x3a] sm:$0xff]  ;;  %v537_v54 = vld [vmem:[%s1888_s11 + $0x4a] sm:$0xff] }
  0x25   : > { %1650 = vmatpush.msra.mxu3 %v1551_v14  ;;  %1559 = vmatmul.msk.f32.vlgmr.msra.gmra.mxu0 %vm304_vm0, %v279_v26  ;;  %v264_v49 = vld [vmem:[%s1888_s11 + $0x68] sm:$0xff]  ;;  %v538_v55 = vld [vmem:[%s1888_s11 + $0x52] sm:$0xff]  ;;  %v1627_v61 = vld [vmem:[%s2836_s3 + $0xe0] sm:$0xff] }
  0x26   : > { %613 = vmatpush.msrb.mxu2 %v1597_v19  ;;  %v1630_v56 = vld [vmem:[%s2836_s3 + $0xf8] sm:$0xff]  ;;  %v1629_v57 = vld [vmem:[%s2836_s3 + $0xf0] sm:$0xff]  ;;  %v539_v58 = vld [vmem:[%s1888_s11 + $0x62] sm:$0xff] }
  0x27   : > { %819 = vmatpush.msrb.mxu0 %v1630_v56  ;;  %v291_v59 = vld [vmem:[%s1888_s11 + $0x91] sm:$0xff]  ;;  %v1628_v60 = vld [vmem:[%s2836_s3 + $0xe8] sm:$0xff]  ;;  %v292_v0 = vld [vmem:[%s1888_s11 + $0x99] sm:$0xff] }
  0x28   : > { %614 = vmatpush.msrb.mxu2 %v1596_v20  ;;  %1571 = vmatmul.msk.f32.vlgmr.msra.gmra.mxu3 %vm304_vm0, %v291_v59  ;;  %v267_v62 = vld [vmem:[%s1888_s11 + $0x90] sm:$0xff]  ;;  %v1626_v1 = vld [vmem:[%s2836_s3 + $0xd8] sm:$0xff]  ;;  %v1624_v7 = vld [vmem:[%s2836_s3 + $0xc8] sm:$0xff] }
  0x29   : > { %820 = vmatpush.msrb.mxu0 %v1629_v57  ;;  %v540_v63 = vld [vmem:[%s1888_s11 + $0x6a] sm:$0xff]  ;;  %v736_v2 = vld [vmem:[%s2836_s3 + $0x78] sm:$0xff]  ;;  %v733_v10 = vld [vmem:[%s2836_s3 + $0x60] sm:$0xff] }
  0x2a   : > { %615 = vmatpush.msrb.mxu2 %v1595_v21  ;;  %v1625_v3 = vld [vmem:[%s2836_s3 + $0xd0] sm:$0xff]  ;;  %737 = vmatpush.msrb.mxu3 %v736_v2  ;;  %v268_v4 = vld [vmem:[%s1888_s11 + $0x98] sm:$0xff]  ;;  %v734_v9 = vld [vmem:[%s2836_s3 + $0x68] sm:$0xff] }
  0x2b   : > { %1567 = vmatmul.msk.f32.gmra.mxu2 %vm304_vm0, %v287_v22  ;;  %821 = vmatpush.msrb.mxu0 %v1628_v60  ;;  %v735_v5 = vld [vmem:[%s2836_s3 + $0x70] sm:$0xff]  ;;  %v541_v6 = vld [vmem:[%s1888_s11 + $0x7a] sm:$0xff]  ;;  %v269_v13 = vld [vmem:[%s1888_s11 + $0xa8] sm:$0xff] }
  0x2c   : > { %1576 = vmatmul.msk.f32.gmra.mxu1 %vm304_vm0, %v256_v23  ;;  %616 = vmatpush.msrb.mxu2 %v1594_v24  ;;  %v293_v8 = vld [vmem:[%s1888_s11 + $0xa9] sm:$0xff]  ;;  %v1623_v11 = vld [vmem:[%s2836_s3 + $0xc0] sm:$0xff]  ;;  %v732_v12 = vld [vmem:[%s2836_s3 + $0x58] sm:$0xff] }
  0x2d   : > { %1560 = vmatmul.msk.f32.gmra.mxu0 %vm304_vm0, %v280_v31  ;;  %738 = vmatpush.msrb.mxu3 %v735_v5  ;;  %v731_v14 = vld [vmem:[%s2836_s3 + $0x50] sm:$0xff]  ;;  %v1622_v15 = vld [vmem:[%s2836_s3 + $0xb8] sm:$0xff]  ;;  %v542_v16 = vld [vmem:[%s1888_s11 + $0x82] sm:$0xff] }
  0x2e   : > { %617 = vmatpush.msrb.mxu2 %v1593_v25  ;;  %822 = vmatpush.msrb.mxu0 %v1627_v61  ;;  %v294_v17 = vld [vmem:[%s1888_s11 + $0xb1] sm:$0xff]  ;;  %v730_v18 = vld [vmem:[%s2836_s3 + $0x48] sm:$0xff]  ;;  %v729_v19 = vld [vmem:[%s2836_s3 + $0x40] sm:$0xff] }
  0x2f   : > { %739 = vmatpush.msrb.mxu3 %v734_v9  ;;  %v1621_v20 = vld [vmem:[%s2836_s3 + $0xb0] sm:$0xff]  ;;  %v728_v21 = vld [vmem:[%s2836_s3 + $0x38] sm:$0xff]  ;;  %v1620_v23 = vld [vmem:[%s2836_s3 + $0xa8] sm:$0xff] }
  0x30   : > { %618 = vmatpush.msrb.mxu2 %v1592_v27  ;;  %1572 = vmatmul.msk.f32.gmra.mxu3 %vm304_vm0, %v292_v0  ;;  %v270_v24 = vld [vmem:[%s1888_s11 + $0xb0] sm:$0xff]  ;;  %v726_v27 = vld [vmem:[%s2836_s3 + $0x28] sm:$0xff]  ;;  %v724_v31 = vld [vmem:[%s2836_s3 + $0x18] sm:$0xff] }
  0x31   : > { %823 = vmatpush.msrb.mxu0 %v1626_v1  ;;  %740 = vmatpush.msrb.mxu3 %v733_v10  ;;  %v727_v25 = vld [vmem:[%s2836_s3 + $0x30] sm:$0xff] }
  0x32   : > { %619 = vmatpush.msrb.mxu2 %v1591_v28  ;;  %v543_v26 = vld [vmem:[%s1888_s11 + $0x92] sm:$0xff]  ;;  %v1619_v28 = vld [vmem:[%s2836_s3 + $0xa0] sm:$0xff] }
  0x33   : > { %1568 = vmatmul.msk.f32.gmra.mxu2 %vm304_vm0, %v288_v29  ;;  %824 = vmatpush.msrb.mxu0 %v1625_v3  ;;  %v725_v29 = vld [vmem:[%s2836_s3 + $0x20] sm:$0xff] }
  0x34   : > { %1577 = vmatmul.msk.f32.gmra.mxu1 %vm304_vm0, %v257_v30  ;;  %741 = vmatpush.msrb.mxu3 %v732_v12  ;;  %v1618_v30 = vld [vmem:[%s2836_s3 + $0x98] sm:$0xff] }
  0x35   : > { %1561 = vmatmul.msk.f32.gmra.mxu0 %vm304_vm0, %v281_v34  ;;  %v723_v34 = vld [vmem:[%s2836_s3 + $0x10] sm:$0xff] }
  0x36   : > { %825 = vmatpush.msrb.mxu0 %v1624_v7  ;;  %742 = vmatpush.msrb.mxu3 %v731_v14 }
  0x38   : > { %1573 = vmatmul.msk.f32.gmra.mxu3 %vm304_vm0, %v293_v8  ;;  %826 = vmatpush.msrb.mxu0 %v1623_v11 }
  0x39   : > { %743 = vmatpush.msrb.mxu3 %v730_v18 }
  0x3a   : > { %827 = vmatpush.msrb.mxu0 %v1622_v15 }
  0x3b   : > { %1569 = vmatmul.msk.f32.gmra.mxu2 %vm304_vm0, %v289_v32  ;;  %744 = vmatpush.msrb.mxu3 %v729_v19 }
  0x3c   : > { %1578 = vmatmul.msk.f32.gmra.mxu1 %vm304_vm0, %v258_v33  ;;  %828 = vmatpush.msrb.mxu0 %v1621_v20 }
  0x3d   : > { %1562 = vmatmul.msk.f32.gmra.mxu0 %vm304_vm0, %v282_v37  ;;  %745 = vmatpush.msrb.mxu3 %v728_v21  ;;  %v722_v37 = vld [vmem:[%s2836_s3 + $0x8] sm:$0xff] }
  0x3e   : > { %829 = vmatpush.msrb.mxu0 %v1620_v23 }
  0x3f   : > { %746 = vmatpush.msrb.mxu3 %v727_v25 }
  0x40   : > { %1574 = vmatmul.msk.f32.gmra.mxu3 %vm304_vm0, %v294_v17  ;;  %830 = vmatpush.msrb.mxu0 %v1619_v28 }
  0x41   : > { %747 = vmatpush.msrb.mxu3 %v726_v27 }
  0x42   : > { %831 = vmatpush.msrb.mxu0 %v1618_v30 }
  0x43   : > { %1570 = vmatmul.msk.f32.gmra.mxu2 %vm304_vm0, %v290_v35  ;;  %748 = vmatpush.msrb.mxu3 %v725_v29  ;;  %v1617_v35 = vld [vmem:[%s2836_s3 + $0x90] sm:$0xff] }
  0x44   : > { %1579 = vmatmul.msk.f32.gmra.mxu1 %vm304_vm0, %v259_v36  ;;  %v544_v36 = vld [vmem:[%s1888_s11 + $0x9a] sm:$0xff]  ;;  %832 = vmatpush.msrb.mxu0 %v1617_v35 }
  0x45   : > { %1563 = vmatmul.msk.f32.gmra.mxu0 %vm304_vm0, %v283_v40  ;;  %749 = vmatpush.msrb.mxu3 %v724_v31  ;;  %v1615_v40 = vld [vmem:[%s2836_s3 + $0x80] sm:$0xff] }
  0x47   : > { %750 = vmatpush.msrb.mxu3 %v723_v34 }
  0x49   : > { %751 = vmatpush.msrb.mxu3 %v722_v37 }
  0x4b   : > { %1599 = vmatmul.msk.f32.vlgmr.msrb.gmra.mxu2 %vm304_vm0, %v531_v39  ;;  %v721_v39 = vld [vmem:[%s2836_s3] sm:$0xff] }
  0x4c   : > { %1580 = vmatmul.msk.f32.gmra.mxu1 %vm304_vm0, %v260_v38  ;;  %v1616_v38 = vld [vmem:[%s2836_s3 + $0x88] sm:$0xff]  ;;  %752 = vmatpush.msrb.mxu3 %v721_v39 }
  0x4d   : > { %1564 = vmatmul.msk.f32.gmra.mxu0 %vm304_vm0, %v284_v43  ;;  %v545_v43 = vld [vmem:[%s1888_s11 + $0xaa] sm:$0xff] }
  0x4e   : > { %833 = vmatpush.msrb.mxu0 %v1616_v38 }
  0x50   : > { %834 = vmatpush.msrb.mxu0 %v1615_v40 }
  0x53   : > { %1600 = vmatmul.msk.f32.gmra.mxu2 %vm304_vm0, %v532_v42 }
  0x54   : > { %1581 = vmatmul.msk.f32.gmra.mxu1 %vm304_vm0, %v261_v41 }
  0x55   : > { %1565 = vmatmul.msk.f32.gmra.mxu0 %vm304_vm0, %v285_v46 }
  0x5b   : > { %1601 = vmatmul.msk.f32.gmra.mxu2 %vm304_vm0, %v533_v45 }
  0x5c   : > { %1582 = vmatmul.msk.f32.gmra.mxu1 %vm304_vm0, %v262_v44 }
  0x63   : > { %1602 = vmatmul.msk.f32.gmra.mxu2 %vm304_vm0, %v534_v48 }
  0x64   : > { %1583 = vmatmul.msk.f32.gmra.mxu1 %vm304_vm0, %v263_v47  ;;  %v546_v47 = vld [vmem:[%s1888_s11 + $0xb2] sm:$0xff] }
  0x6b   : > { %1603 = vmatmul.msk.f32.gmra.mxu2 %vm304_vm0, %v535_v50 }
  0x6c   : > { %1584 = vmatmul.msk.f32.gmra.mxu1 %vm304_vm0, %v264_v49 }
  0x73   : > { %1604 = vmatmul.msk.f32.gmra.mxu2 %vm304_vm0, %v536_v52  ;;  %v2125_v52 = vld [vmem:[%s2835_s2] ss:$0 sm:$0xff] }
  0x74   : > { %1585 = vmatmul.msk.f32.gmra.mxu1 %vm304_vm0, %v265_v51 }
  0x7b   : > { %1605 = vmatmul.msk.f32.gmra.mxu2 %vm304_vm0, %v537_v54 }
  0x7c   : > { %1586 = vmatmul.msk.f32.gmra.mxu1 %vm304_vm0, %v266_v53 }
  0x83   : > { %1606 = vmatmul.msk.f32.gmra.mxu2 %vm304_vm0, %v538_v55 }
  0x84   : > { %1587 = vmatmul.msk.f32.gmra.mxu1 %vm304_vm0, %v267_v62 }
  0x8b   : > { %1607 = vmatmul.msk.f32.gmra.mxu2 %vm304_vm0, %v539_v58 }
  0x8c   : > { %1588 = vmatmul.msk.f32.gmra.mxu1 %vm304_vm0, %v268_v4 }
  0x93   : > { %1608 = vmatmul.msk.f32.gmra.mxu2 %vm304_vm0, %v540_v63 }
  0x94   : > { %1589 = vmatmul.msk.f32.gmra.mxu1 %vm304_vm0, %v269_v13 }
  0x9b   : > { %1609 = vmatmul.msk.f32.gmra.mxu2 %vm304_vm0, %v541_v6 }
  0x9c   : > { %1590 = vmatmul.msk.f32.gmra.mxu1 %vm304_vm0, %v270_v24 }
  0xa1   : > { %v483_v32 = vpop.f32.mrf.mxu1 }
  0xa2   : > { %v370_v44 = vpop.f32.mrf.mxu0 }
  0xa3   : > { %1610 = vmatmul.msk.f32.gmra.mxu2 %vm304_vm0, %v542_v16  ;;  %v484_v51 = vadd.f32 %v483_v32, %v370_v44 }
  0xa6   : > { %v2063_v22 = vpop.f32.mrf.mxu2 }
  0xa9   : > { %v486_v41 = vpop.f32.mrf.mxu1 }
  0xaa   : > { %v373_v49 = vpop.f32.mrf.mxu0 }
  0xab   : > { %1611 = vmatmul.msk.f32.gmra.mxu2 %vm304_vm0, %v543_v26  ;;  %v487_v58 = vadd.f32 %v486_v41, %v373_v49 }
  0xae   : > { %v2090_v33 = vpop.f32.mrf.mxu2 }
  0xb1   : > { %v489_v46 = vpop.f32.mrf.mxu1 }
  0xb2   : > { %v376_v55 = vpop.f32.mrf.mxu0 }
  0xb3   : > { %1612 = vmatmul.msk.f32.gmra.mxu2 %vm304_vm0, %v544_v36  ;;  %v490_v0 = vadd.f32 %v489_v46, %v376_v55 }
  0xb6   : > { %v2112_v42 = vpop.f32.mrf.mxu2 }
  0xb9   : > { %v492_v50 = vpop.f32.mrf.mxu1 }
  0xba   : > { %v379_v63 = vpop.f32.mrf.mxu0 }
  0xbb   : > { %1613 = vmatmul.msk.f32.gmra.mxu2 %vm304_vm0, %v545_v43  ;;  %v493_v6 = vadd.f32 %v492_v50, %v379_v63 }
  0xbe   : > { %v2116_v45 = vpop.f32.mrf.mxu2 }
  0xc1   : > { %v495_v59 = vpop.f32.mrf.mxu1 }
  0xc2   : > { %v382_v8 = vpop.f32.mrf.mxu0 }
  0xc3   : > { %1614 = vmatmul.msk.f32.gmra.mxu2 %vm304_vm0, %v546_v47  ;;  %v496_v13 = vadd.f32 %v495_v59, %v382_v8  ;;  %v406_v59 = vpop.f32.mrf.mxu3 }
  0xc6   : > { %v2120_v48 = vpop.f32.mrf.mxu2 }
  0xc9   : > { %v498_v2 = vpop.f32.mrf.mxu1 }
  0xca   : > { %v385_v16 = vpop.f32.mrf.mxu0 }
  0xcb   : > { %v499_v20 = vadd.f32 %v498_v2, %v385_v16 }
  0xce   : > { %v621_v53 = vpop.f32.mrf.mxu2 }
  0xcf   : > { %v669_v54 = vadd.f32 %v621_v53, %v484_v51 }
  0xd1   : > { %v689_v56 = vadd.f32 %v2125_v52, %v669_v54  ;;  %v501_v11 = vpop.f32.mrf.mxu1 }
  0xd2   : > { %v388_v25 = vpop.f32.mrf.mxu0 }
  0xd3   : > { %v705_v57 = vmax.f32 %v689_v56, 0.0  ;;  %v502_v27 = vadd.f32 %v501_v11, %v388_v25 }
  0xd5   : > { %753 = vmatmul.f32.vlgmr.msrb.gmra.mxu3 %v705_v57  ;;  %835 = vmatmul.f32.vlgmr.msrb.gmra.mxu0 %v705_v57 }
  0xd6   : > { %v624_v60 = vpop.f32.mrf.mxu2 }
  0xd7   : > { %v670_v61 = vadd.f32 %v624_v60, %v487_v58 }
  0xd9   : > { %v690_v62 = vadd.f32 %v2125_v52, %v670_v61  ;;  %v504_v19 = vpop.f32.mrf.mxu1 }
  0xda   : > { %v505_v35 = vadd.f32 %v504_v19, %v2063_v22 }
  0xdb   : > { %v706_v1 = vmax.f32 %v690_v62, 0.0 }
  0xdd   : > { %756 = vmatmul.f32.gmra.mxu3 %v706_v1  ;;  %838 = vmatmul.f32.gmra.mxu0 %v706_v1 }
  0xde   : > { %v627_v3 = vpop.f32.mrf.mxu2 }
  0xdf   : > { %v671_v4 = vadd.f32 %v627_v3, %v490_v0 }
  0xe1   : > { %v691_v5 = vadd.f32 %v2125_v52, %v671_v4  ;;  %v507_v29 = vpop.f32.mrf.mxu1 }
  0xe2   : > { %v508_v41 = vadd.f32 %v507_v29, %v2090_v33 }
  0xe3   : > { %v707_v7 = vmax.f32 %v691_v5, 0.0 }
  0xe5   : > { %759 = vmatmul.f32.gmra.mxu3 %v707_v7  ;;  %841 = vmatmul.f32.gmra.mxu0 %v707_v7 }
  0xe6   : > { %v630_v9 = vpop.f32.mrf.mxu2 }
  0xe7   : > { %v672_v10 = vadd.f32 %v630_v9, %v493_v6 }
  0xe9   : > { %v692_v12 = vadd.f32 %v2125_v52, %v672_v10  ;;  %v510_v36 = vpop.f32.mrf.mxu1 }
  0xea   : > { %v511_v22 = vadd.f32 %v510_v36, %v2112_v42 }
  0xeb   : > { %v708_v14 = vmax.f32 %v692_v12, 0.0 }
  0xed   : > { %762 = vmatmul.f32.gmra.mxu3 %v708_v14  ;;  %844 = vmatmul.f32.gmra.mxu0 %v708_v14 }
  0xee   : > { %v633_v15 = vpop.f32.mrf.mxu2 }
  0xef   : > { %v673_v17 = vadd.f32 %v633_v15, %v496_v13 }
  0xf1   : > { %v693_v18 = vadd.f32 %v2125_v52, %v673_v17  ;;  %v513_v46 = vpop.f32.mrf.mxu1 }
  0xf2   : > { %v514_v33 = vadd.f32 %v513_v46, %v2116_v45  ;;  %v409_v45 = vpop.f32.mrf.mxu3 }
  0xf3   : > { %v709_v21 = vmax.f32 %v693_v18, 0.0 }
  0xf5   : > { %765 = vmatmul.f32.gmra.mxu3 %v709_v21  ;;  %847 = vmatmul.f32.gmra.mxu0 %v709_v21 }
  0xf6   : > { %v636_v23 = vpop.f32.mrf.mxu2 }
  0xf7   : > { %v674_v24 = vadd.f32 %v636_v23, %v499_v20 }
  0xf9   : > { %v694_v26 = vadd.f32 %v2125_v52, %v674_v24  ;;  %v516_v54 = vpop.f32.mrf.mxu1 }
  0xfa   : > { %v517_v42 = vadd.f32 %v516_v54, %v2120_v48  ;;  %v412_v48 = vpop.f32.mrf.mxu3 }
  0xfb   : > { %v710_v28 = vmax.f32 %v694_v26, 0.0 }
  0xfd   : > { %768 = vmatmul.f32.gmra.mxu3 %v710_v28  ;;  %850 = vmatmul.f32.gmra.mxu0 %v710_v28 }
  0xfe   : > { %v639_v30 = vpop.f32.mrf.mxu2 }
  0xff   : > { %v675_v31 = vadd.f32 %v639_v30, %v502_v27 }
 0x101   : > { %v695_v32 = vadd.f32 %v2125_v52, %v675_v31  ;;  %v519_v60 = vpop.f32.mrf.mxu1 }
 0x102   : > { %v520_v1 = vadd.f32 %v519_v60, %v406_v59  ;;  %v415_v17 = vpop.f32.mrf.mxu3 }
 0x103   : > { %v711_v34 = vmax.f32 %v695_v32, 0.0 }
 0x105   : > { %771 = vmatmul.f32.gmra.mxu3 %v711_v34  ;;  %853 = vmatmul.f32.gmra.mxu0 %v711_v34 }
 0x106   : > { %v642_v37 = vpop.f32.mrf.mxu2 }
 0x107   : > { %v676_v38 = vadd.f32 %v642_v37, %v505_v35 }
 0x109   : > { %v696_v39 = vadd.f32 %v2125_v52, %v676_v38  ;;  %v522_v3 = vpop.f32.mrf.mxu1 }
 0x10a   : > { %v523_v7 = vadd.f32 %v522_v3, %v409_v45 }
 0x10b   : > { %v712_v40 = vmax.f32 %v696_v39, 0.0 }
 0x10d   : > { %774 = vmatmul.f32.gmra.mxu3 %v712_v40  ;;  %856 = vmatmul.f32.gmra.mxu0 %v712_v40 }
 0x10e   : > { %v645_v43 = vpop.f32.mrf.mxu2 }
 0x10f   : > { %v677_v44 = vadd.f32 %v645_v43, %v508_v41 }
 0x111   : > { %v697_v47 = vadd.f32 %v2125_v52, %v677_v44  ;;  %v525_v10 = vpop.f32.mrf.mxu1 }
 0x112   : > { %v526_v13 = vadd.f32 %v525_v10, %v412_v48 }
 0x113   : > { %v713_v49 = vmax.f32 %v697_v47, 0.0 }
 0x115   : > { %777 = vmatmul.f32.gmra.mxu3 %v713_v49  ;;  %859 = vmatmul.f32.gmra.mxu0 %v713_v49 }
 0x116   : > { %v648_v50 = vpop.f32.mrf.mxu2 }
 0x117   : > { %v678_v51 = vadd.f32 %v648_v50, %v511_v22 }
 0x119   : > { %v698_v53 = vadd.f32 %v2125_v52, %v678_v51  ;;  %v528_v18 = vpop.f32.mrf.mxu1 }
 0x11a   : > { %v529_v20 = vadd.f32 %v528_v18, %v415_v17 }
 0x11b   : > { %v714_v55 = vmax.f32 %v698_v53, 0.0 }
 0x11d   : > { %780 = vmatmul.f32.gmra.mxu3 %v714_v55  ;;  %862 = vmatmul.f32.gmra.mxu0 %v714_v55 }
 0x11e   : > { %v651_v56 = vpop.f32.mrf.mxu2 }
 0x11f   : > { %v679_v57 = vadd.f32 %v651_v56, %v514_v33 }
 0x121   : > { %v699_v58 = vadd.f32 %v2125_v52, %v679_v57 }
 0x123   : > { %v715_v61 = vmax.f32 %v699_v58, 0.0 }
 0x125   : > { %783 = vmatmul.f32.gmra.mxu3 %v715_v61  ;;  %865 = vmatmul.f32.gmra.mxu0 %v715_v61 }
 0x126   : > { %v654_v62 = vpop.f32.mrf.mxu2 }
 0x127   : > { %v680_v63 = vadd.f32 %v654_v62, %v517_v42 }
 0x129   : > { %v700_v0 = vadd.f32 %v2125_v52, %v680_v63 }
 0x12b   : > { %v716_v2 = vmax.f32 %v700_v0, 0.0 }
 0x12d   : > { %786 = vmatmul.f32.gmra.mxu3 %v716_v2  ;;  %868 = vmatmul.f32.gmra.mxu0 %v716_v2 }
 0x12e   : > { %v657_v4 = vpop.f32.mrf.mxu2 }
 0x12f   : > { %v681_v5 = vadd.f32 %v657_v4, %v520_v1 }
 0x131   : > { %v701_v6 = vadd.f32 %v2125_v52, %v681_v5 }
 0x133   : > { %v717_v8 = vmax.f32 %v701_v6, 0.0 }
 0x135   : > { %789 = vmatmul.f32.gmra.mxu3 %v717_v8  ;;  %871 = vmatmul.f32.gmra.mxu0 %v717_v8 }
 0x136   : > { %v660_v9 = vpop.f32.mrf.mxu2 }
 0x137   : > { %v682_v11 = vadd.f32 %v660_v9, %v523_v7 }
 0x139   : > { %v702_v12 = vadd.f32 %v2125_v52, %v682_v11 }
 0x13b   : > { %v718_v14 = vmax.f32 %v702_v12, 0.0 }
 0x13d   : > { %792 = vmatmul.f32.gmra.mxu3 %v718_v14  ;;  %874 = vmatmul.f32.gmra.mxu0 %v718_v14 }
 0x13e   : > { %v663_v15 = vpop.f32.mrf.mxu2 }
 0x13f   : > { %v683_v16 = vadd.f32 %v663_v15, %v526_v13 }
 0x141   : > { %v703_v19 = vadd.f32 %v2125_v52, %v683_v16 }
 0x143   : > { %v719_v21 = vmax.f32 %v703_v19, 0.0 }
 0x145   : > { %795 = vmatmul.f32.gmra.mxu3 %v719_v21  ;;  %877 = vmatmul.f32.gmra.mxu0 %v719_v21 }
 0x146   : > { %v666_v23 = vpop.f32.mrf.mxu2 }
 0x147   : > { %v684_v24 = vadd.f32 %v666_v23, %v529_v20 }
 0x149   : > { %v704_v25 = vadd.f32 %v2125_v52, %v684_v24 }
 0x14b   : > { %v720_v26 = vmax.f32 %v704_v25, 0.0 }
 0x14d   : > { %798 = vmatmul.f32.gmra.mxu3 %v720_v26  ;;  %880 = vmatmul.f32.gmra.mxu0 %v720_v26 }
 0x152   : > { %v836_v27 = vpop.f32.mrf.mxu0 }
 0x158   : > { %v754_v28 = vpop.f32.mrf.mxu3 }
 0x159   : > { %v884_v29 = vmax.f32 %v754_v28, %v836_v27 }
 0x15a   : > { %v839_v30 = vpop.f32.mrf.mxu0 }
 0x15b   : > { %900 = vst.msk [vmem:[#allocation2] sm:$0xff] %vm304_vm0, %v884_v29 }
 0x160   : > { %v757_v31 = vpop.f32.mrf.mxu3 }
 0x161   : > { %v885_v32 = vmax.f32 %v757_v31, %v839_v30 }
 0x162   : > { %v842_v34 = vpop.f32.mrf.mxu0  ;;  %v2159_v0 = vld [vmem:[#allocation2 + $0x6] sm:$0x1]  ;;  %v2161_v2 = vld [vmem:[#allocation2 + $0x7] sm:$0x1]  ;;  %v2163_v3 = vld [vmem:[#allocation2 + $0x2] sm:$0x1] }
 0x163   : > { %901 = vst.msk [vmem:[#allocation2 + $0x8] sm:$0xff] %vm304_vm0, %v885_v32  ;;  %v2165_v4 = vld [vmem:[#allocation2 + $0x3] sm:$0x1]  ;;  %v2173_v8 = vld [vmem:[#allocation2 + $0x4] sm:$0x1] }
 0x164   : > { %v2177_v9 = vld [vmem:[#allocation2 + $0x5] sm:$0x1]  ;;  %v2181_v11 = vld [vmem:[#allocation2] sm:$0x1]  ;;  %v2183_v12 = vld [vmem:[#allocation2 + $0x1] sm:$0x1] }
 0x168   : > { %v760_v35 = vpop.f32.mrf.mxu3 }
 0x169   : > { %v886_v36 = vmax.f32 %v760_v35, %v842_v34  ;;  %v1086_v34 = vmax.f32 %v2159_v0, %v2161_v2  ;;  %v987_v35 = vmax.f32 %v2163_v3, %v2165_v4 }
 0x16a   : > { %v845_v37 = vpop.f32.mrf.mxu0 }
 0x16b   : > { %902 = vst.msk [vmem:[#allocation2 + $0x10] sm:$0xff] %vm304_vm0, %v886_v36 }
 0x170   : > { %v763_v52 = vpop.f32.mrf.mxu3 }
 0x171   : > { %v887_v38 = vmax.f32 %v763_v52, %v845_v37 }
 0x172   : > { %v848_v39 = vpop.f32.mrf.mxu0  ;;  %v1071_v1 = vld [vmem:[#allocation2 + $0x16] sm:$0x1]  ;;  %v1079_v45 = vld [vmem:[#allocation2 + $0x17] sm:$0x1]  ;;  %v2169_v6 = vld [vmem:[#allocation2 + $0x12] sm:$0x1] }
 0x173   : > { %903 = vst.msk [vmem:[#allocation2 + $0x18] sm:$0xff] %vm304_vm0, %v887_v38  ;;  %v2171_v7 = vld [vmem:[#allocation2 + $0x13] sm:$0x1]  ;;  %v2175_v48 = vld [vmem:[#allocation2 + $0x14] sm:$0x1]  ;;  %v1087_v19 = vmax.f32 %v1071_v1, %v1079_v45 }
 0x174   : > { %v2179_v10 = vld [vmem:[#allocation2 + $0x15] sm:$0x1]  ;;  %v2194_v17 = vld [vmem:[#allocation2 + $0x10] sm:$0x1]  ;;  %v2196_v18 = vld [vmem:[#allocation2 + $0x11] sm:$0x1] }
 0x175   : > { %v2276_v1 = vld [vmem:[#allocation2 + $0xb] sm:$0x1] }
 0x178   : > { %v766_v40 = vpop.f32.mrf.mxu3 }
 0x179   : > { %v888_v41 = vmax.f32 %v766_v40, %v848_v39  ;;  %v988_v39 = vmax.f32 %v2169_v6, %v2171_v7  ;;  %v1038_v40 = vmax.f32 %v2173_v8, %v2177_v9 }
 0x17a   : > { %v851_v43 = vpop.f32.mrf.mxu0  ;;  %v2186_v13 = vld [vmem:[#allocation2 + $0x1a] sm:$0x1]  ;;  %v2188_v14 = vld [vmem:[#allocation2 + $0x1b] sm:$0x1]  ;;  %v2190_v15 = vld [vmem:[#allocation2 + $0x1e] sm:$0x1] }
 0x17b   : > { %904 = vst.msk [vmem:[#allocation2 + $0x20] sm:$0xff] %vm304_vm0, %v888_v41  ;;  %v2192_v16 = vld [vmem:[#allocation2 + $0x1f] sm:$0x1]  ;;  %v2198_v20 = vld [vmem:[#allocation2 + $0x18] sm:$0x1]  ;;  %v1039_v41 = vmax.f32 %v2175_v48, %v2179_v10  ;;  %v1003_v6 = vrot.slane %v988_v39, 7 }
 0x17c   : > { %v2200_v21 = vld [vmem:[#allocation2 + $0x19] sm:$0x1]  ;;  %v2202_v23 = vld [vmem:[#allocation2 + $0x1c] sm:$0x1]  ;;  %v2204_v24 = vld [vmem:[#allocation2 + $0x1d] sm:$0x1] }
 0x17d   : > { %v2285_v48 = vld [vmem:[#allocation2 + $0xe] sm:$0x1]  ;;  %v2287_v10 = vld [vmem:[#allocation2 + $0xf] sm:$0x1] }
 0x180   : > { %v769_v44 = vpop.f32.mrf.mxu3 }
 0x181   : > { %v889_v46 = vmax.f32 %v769_v44, %v851_v43  ;;  %v932_v43 = vmax.f32 %v2181_v11, %v2183_v12 }
 0x182   : > { %v854_v47 = vpop.f32.mrf.mxu0  ;;  %v2206_v25 = vld [vmem:[#allocation2 + $0x26] sm:$0x1]  ;;  %v2208_v26 = vld [vmem:[#allocation2 + $0x27] sm:$0x1]  ;;  %v2210_v27 = vld [vmem:[#allocation2 + $0x22] sm:$0x1] }
 0x183   : > { %905 = vst.msk [vmem:[#allocation2 + $0x28] sm:$0xff] %vm304_vm0, %v889_v46  ;;  %v2212_v28 = vld [vmem:[#allocation2 + $0x23] sm:$0x1]  ;;  %v2214_v29 = vld [vmem:[#allocation2 + $0x24] sm:$0x1] }
 0x184   : > { %v2216_v30 = vld [vmem:[#allocation2 + $0x25] sm:$0x1]  ;;  %v2218_v31 = vld [vmem:[#allocation2 + $0x20] sm:$0x1]  ;;  %v2220_v32 = vld [vmem:[#allocation2 + $0x21] sm:$0x1] }
 0x185   : > { %v1040_v45 = vmax.f32 %v2214_v29, %v2216_v30 }
 0x188   : > { %v772_v49 = vpop.f32.mrf.mxu3 }
 0x189   : > { %v890_v22 = vmax.f32 %v772_v49, %v854_v47 }
 0x18a   : > { %v857_v50 = vpop.f32.mrf.mxu0  ;;  %v2226_v36 = vld [vmem:[#allocation2 + $0x2a] sm:$0x1]  ;;  %v2228_v37 = vld [vmem:[#allocation2 + $0x2b] sm:$0x1]  ;;  %v2230_v52 = vld [vmem:[#allocation2 + $0x2e] sm:$0x1] }
 0x18b   : > { %906 = vst.msk [vmem:[#allocation2 + $0x30] sm:$0xff] %vm304_vm0, %v890_v22  ;;  %v2232_v38 = vld [vmem:[#allocation2 + $0x2f] sm:$0x1]  ;;  %v2242_v44 = vld [vmem:[#allocation2 + $0x28] sm:$0x1]  ;;  %v2248_v22 = vrot.slane %v1087_v19, 7  ;;  %v1186_v7 = vmax.f32 %v2226_v36, %v2228_v37 }
 0x18c   : > { %v2244_v46 = vld [vmem:[#allocation2 + $0x29] sm:$0x1]  ;;  %v2246_v47 = vld [vmem:[#allocation2 + $0x2c] sm:$0x1]  ;;  %v1226_v37 = vld [vmem:[#allocation2 + $0xd] sm:$0x1] }
 0x18d   : > { %v1202_v39 = vrot.slane %v1186_v7, 6 }
 0x190   : > { %v775_v51 = vpop.f32.mrf.mxu3 }
 0x191   : > { %v891_v53 = vmax.f32 %v775_v51, %v857_v50  ;;  %v1351_v50 = vld [vmem:[%s2837_s4 + $0xf8] sm:$0xff] }
 0x192   : > { %v860_v54 = vpop.f32.mrf.mxu0  ;;  %v1335_v51 = vld [vmem:[%s2837_s4 + $0x78] sm:$0xff]  ;;  %1408 = vmatpush.msra.mxu2 %v1351_v50 }
 0x193   : > { %907 = vst.msk [vmem:[#allocation2 + $0x38] sm:$0xff] %vm304_vm0, %v891_v53  ;;  %v1367_v53 = vld [vmem:[%s2837_s4 + $0x178] sm:$0xff]  ;;  %1388 = vmatpush.msrb.mxu1 %v1335_v51  ;;  %v1350_v51 = vld [vmem:[%s2837_s4 + $0xf0] sm:$0xff] }
 0x194   : > { %1428 = vmatpush.msra.mxu3 %v1367_v53  ;;  %v1334_v53 = vld [vmem:[%s2837_s4 + $0x70] sm:$0xff]  ;;  %1409 = vmatpush.msra.mxu2 %v1350_v51  ;;  %v1333_v51 = vld [vmem:[%s2837_s4 + $0x68] sm:$0xff] }
 0x195   : > { %1389 = vmatpush.msrb.mxu1 %v1334_v53  ;;  %v1365_v53 = vld [vmem:[%s2837_s4 + $0x168] sm:$0xff] }
 0x197   : > { %1390 = vmatpush.msrb.mxu1 %v1333_v51 }
 0x198   : > { %v778_v55 = vpop.f32.mrf.mxu3 }
 0x199   : > { %v892_v33 = vmax.f32 %v778_v55, %v860_v54  ;;  %v1185_v54 = vmax.f32 %v2186_v13, %v2188_v14  ;;  %v1283_v55 = vmax.f32 %v2190_v15, %v2192_v16  ;;  %v1284_v13 = vmax.f32 %v2230_v52, %v2232_v38 }
 0x19a   : > { %v863_v56 = vpop.f32.mrf.mxu0  ;;  %v1054_v14 = vrot.slane %v1039_v41, 7  ;;  %v2306_v50 = vld [vmem:[#allocation2 + $0x3a] sm:$0x1]  ;;  %v2348_v0 = vld [vmem:[#allocation2 + $0x3c] sm:$0x1] }
 0x19b   : > { %908 = vst.msk [vmem:[#allocation2 + $0x40] sm:$0xff] %vm304_vm0, %v892_v33  ;;  %v933_v33 = vmax.f32 %v2194_v17, %v2196_v18  ;;  %v974_v17 = vld [vmem:[#allocation2 + $0x32] sm:$0x1]  ;;  %v982_v18 = vld [vmem:[#allocation2 + $0x33] sm:$0x1]  ;;  %v2298_v41 = vrot.slane %v1284_v13, 6 }
 0x19c   : > { %v990_v52 = vmax.f32 %v974_v17, %v982_v18  ;;  %v1055_v7 = vsel %vm949_vm1, %v1054_v14, %v1038_v40  ;;  %v2350_v2 = vld [vmem:[#allocation2 + $0x3d] sm:$0x1]  ;;  %v2358_v9 = vld [vmem:[#allocation2 + $0x3e] sm:$0x1] }
 0x19d   : > { %v948_v19 = vrot.slane %v933_v33, 7  ;;  %v2319_v33 = vld [vmem:[#allocation2 + $0x30] sm:$0x1] }
 0x1a0   : > { %v781_v57 = vpop.f32.mrf.mxu3 }
 0x1a1   : > { %v893_v58 = vmax.f32 %v781_v57, %v863_v56  ;;  %v1073_v57 = vld [vmem:[#allocation2 + $0x36] sm:$0x1] }
 0x1a2   : > { %v866_v59 = vpop.f32.mrf.mxu0  ;;  %v1082_v3 = vld [vmem:[#allocation2 + $0x47] sm:$0x1]  ;;  %v2353_v4 = vld [vmem:[#allocation2 + $0x42] sm:$0x1]  ;;  %v2380_v18 = vld [vmem:[#allocation2 + $0x40] sm:$0x1] }
 0x1a3   : > { %909 = vst.msk [vmem:[#allocation2 + $0x48] sm:$0xff] %vm304_vm0, %v893_v58  ;;  %v1081_v58 = vld [vmem:[#allocation2 + $0x37] sm:$0x1] }
 0x1a4   : > { %v1089_v16 = vmax.f32 %v1073_v57, %v1081_v58 }
 0x1a8   : > { %v784_v60 = vpop.f32.mrf.mxu3 }
 0x1a9   : > { %v894_v61 = vmax.f32 %v784_v60, %v866_v59  ;;  %v1137_v59 = vmax.f32 %v2198_v20, %v2200_v21  ;;  %v1228_v60 = vld [vmem:[#allocation2 + $0x2d] sm:$0x1]  ;;  %v1120_v20 = vld [vmem:[#allocation2 + $0x8] sm:$0x1]  ;;  %v1128_v21 = vld [vmem:[#allocation2 + $0x9] sm:$0x1] }
 0x1aa   : > { %v869_v42 = vpop.f32.mrf.mxu0 }
 0x1ab   : > { %910 = vst.msk [vmem:[#allocation2 + $0x50] sm:$0xff] %vm304_vm0, %v894_v61  ;;  %v1235_v61 = vmax.f32 %v2202_v23, %v2204_v24  ;;  %v1138_v23 = vmax.f32 %v2242_v44, %v2244_v46  ;;  %v1236_v24 = vmax.f32 %v2246_v47, %v1228_v60  ;;  %v2300_v44 = vld [vmem:[#allocation2 + $0x34] sm:$0x1]  ;;  %v2302_v46 = vld [vmem:[#allocation2 + $0x35] sm:$0x1] }
 0x1ac   : > { %v2323_v60 = vld [vmem:[#allocation2 + $0x3b] sm:$0x1]  ;;  %v1041_v13 = vmax.f32 %v2300_v44, %v2302_v46 }
 0x1ad   : > { %v1250_v29 = vrot.slane %v1235_v61, 7  ;;  %v1154_v57 = vrot.slane %v1138_v23, 6  ;;  %v1252_v58 = vrot.slane %v1236_v24, 6  ;;  %v2325_v61 = vld [vmem:[#allocation2 + $0x38] sm:$0x1] }
 0x1b0   : > { %v787_v62 = vpop.f32.mrf.mxu3 }
 0x1b1   : > { %v895_v63 = vmax.f32 %v787_v62, %v869_v42  ;;  %v1088_v42 = vmax.f32 %v2206_v25, %v2208_v26  ;;  %v989_v62 = vmax.f32 %v2210_v27, %v2212_v28  ;;  %v1200_v25 = vrot.slane %v1185_v54, 7  ;;  %v1218_v28 = vld [vmem:[#allocation2 + $0xc] sm:$0x1]  ;;  %v1366_v54 = vld [vmem:[%s2837_s4 + $0x170] sm:$0xff] }
 0x1b2   : > { %v2167_v5 = vpop.f32.mrf.mxu0  ;;  %v1298_v26 = vrot.slane %v1283_v55, 7  ;;  %v1152_v27 = vrot.slane %v1137_v59, 7  ;;  %v1282_v55 = vmax.f32 %v2285_v48, %v2287_v10  ;;  %1429 = vmatpush.msra.mxu3 %v1366_v54  ;;  %v950_v48 = vsel %vm949_vm1, %v948_v19, %v932_v43  ;;  %v983_v43 = vld [vmem:[#allocation2 + $0x43] sm:$0x1]  ;;  %v2368_v10 = vld [vmem:[#allocation2 + $0x45] sm:$0x1] }
 0x1b3   : > { %911 = vst.msk [vmem:[#allocation2 + $0x58] sm:$0xff] %vm304_vm0, %v895_v63  ;;  %v2274_v63 = vld [vmem:[#allocation2 + $0xa] sm:$0x1]  ;;  %v1104_v30 = vrot.slane %v1088_v42, 6  ;;  %v2327_v42 = vld [vmem:[#allocation2 + $0x39] sm:$0x1] }
 0x1b4   : > { %v1184_v38 = vmax.f32 %v2274_v63, %v2276_v1  ;;  %v1234_v63 = vmax.f32 %v1218_v28, %v1226_v37  ;;  %v2329_v1 = vld [vmem:[#allocation2 + $0x46] sm:$0x1]  ;;  %v1299_v11 = vsel %vm949_vm1, %v1298_v26, %v1282_v55  ;;  %v2382_v19 = vld [vmem:[#allocation2 + $0x41] sm:$0x1]  ;;  %v2398_v28 = vld [vmem:[#allocation2 + $0x48] sm:$0x1]  ;;  %v991_v37 = vmax.f32 %v2353_v4, %v983_v43  ;;  %1430 = vmatpush.msra.mxu3 %v1365_v53 }
 0x1b5   : > { %v1090_v24 = vmax.f32 %v2329_v1, %v1082_v3  ;;  %v936_v1 = vmax.f32 %v2380_v18, %v2382_v19  ;;  %v1331_v3 = vld [vmem:[%s2837_s4 + $0x58] sm:$0xff] }
 0x1b6   : > { %v1201_v8 = vsel %vm949_vm1, %v1200_v25, %v1184_v38  ;;  %v1251_v14 = vsel %vm949_vm1, %v1250_v29, %v1234_v63  ;;  %v2389_v25 = vld [vmem:[#allocation2 + $0x4b] sm:$0x1]  ;;  %v2400_v29 = vld [vmem:[#allocation2 + $0x49] sm:$0x1]  ;;  %v2416_v38 = vld [vmem:[#allocation2 + $0x4c] sm:$0x1] }
 0x1b7   : > { %v2392_v26 = vsel %vm952_vm2, %v1202_v39, %v1201_v8  ;;  %v2418_v39 = vld [vmem:[#allocation2 + $0x4d] sm:$0x1]  ;;  %v2421_v44 = vsel %vm952_vm2, %v1252_v58, %v1251_v14  ;;  %v1364_v58 = vld [vmem:[%s2837_s4 + $0x160] sm:$0xff]  ;;  %v1140_v4 = vmax.f32 %v2398_v28, %v2400_v29 }
 0x1b8   : > { %v790_v49 = vpop.f32.mrf.mxu3  ;;  %1431 = vmatpush.msra.mxu3 %v1364_v58 }
 0x1b9   : > { %v896_v56 = vmax.f32 %v790_v49, %v2167_v5  ;;  %v934_v5 = vmax.f32 %v2218_v31, %v2220_v32  ;;  %v1005_v31 = vrot.slane %v989_v62, 6  ;;  %v1056_v32 = vrot.slane %v1040_v45, 6 }
 0x1ba   : > { %v875_v15 = vpop.f32.mrf.mxu0  ;;  %v2304_v49 = vrot.slane %v1089_v16, 5  ;;  %v1136_v62 = vmax.f32 %v1120_v20, %v1128_v21  ;;  %v1103_v45 = vsel %vm949_vm1, %v2248_v22, %v1086_v34  ;;  %v2355_v34 = vrot.slane %v990_v52, 5  ;;  %v2497_v14 = vld [vmem:[#allocation2 + $0x5a] sm:$0x1] }
 0x1bb   : > { %912 = vst.msk [vmem:[#allocation2 + $0x60] sm:$0xff] %vm304_vm0, %v896_v56  ;;  %v2294_v36 = vrot.slane %v934_v5, 6  ;;  %v2321_v56 = vld [vmem:[#allocation2 + $0x31] sm:$0x1]  ;;  %v1004_v5 = vsel %vm949_vm1, %v1003_v6, %v987_v35  ;;  %v2360_v35 = vld [vmem:[#allocation2 + $0x3f] sm:$0x1]  ;;  %v1105_v40 = vsel %vm952_vm2, %v1104_v30, %v1103_v45  ;;  %v1187_v16 = vmax.f32 %v2306_v50, %v2323_v60 }
 0x1bc   : > { %v1153_v12 = vsel %vm949_vm1, %v1152_v27, %v1136_v62  ;;  %v1006_v22 = vsel %vm952_vm2, %v1005_v31, %v1004_v5  ;;  %v2366_v6 = vld [vmem:[#allocation2 + $0x44] sm:$0x1]  ;;  %v2378_v17 = vsel %vm952_vm2, %v1056_v32, %v1055_v7  ;;  %v935_v20 = vmax.f32 %v2319_v33, %v2321_v56  ;;  %v2404_v31 = vld [vmem:[#allocation2 + $0x56] sm:$0x1]  ;;  %v2406_v32 = vld [vmem:[#allocation2 + $0x57] sm:$0x1] }
 0x1bd   : > { %v1139_v21 = vmax.f32 %v2325_v61, %v2327_v42  ;;  %v2396_v27 = vsel %vm952_vm2, %v2294_v36, %v950_v48  ;;  %v1237_v30 = vmax.f32 %v2348_v0, %v2350_v2  ;;  %v2411_v52 = vsel %vm952_vm2, %v2298_v41, %v1299_v11  ;;  %v1349_v41 = vld [vmem:[%s2837_s4 + $0xe8] sm:$0xff]  ;;  %v1348_v56 = vld [vmem:[%s2837_s4 + $0xe0] sm:$0xff]  ;;  %v2458_v5 = vld [vmem:[#allocation2 + $0x52] sm:$0x1] }
 0x1be   : > { %v2414_v36 = vsel %vm952_vm2, %v1154_v57, %v1153_v12  ;;  %v1285_v50 = vmax.f32 %v2358_v9, %v2360_v35  ;;  %v1042_v54 = vmax.f32 %v2366_v6, %v2368_v10  ;;  %v1204_v33 = vrot.slane %v1187_v16, 5  ;;  %1410 = vmatpush.msra.mxu2 %v1349_v41  ;;  %v1332_v57 = vld [vmem:[%s2837_s4 + $0x60] sm:$0xff]  ;;  %v2460_v7 = vld [vmem:[#allocation2 + $0x53] sm:$0x1]  ;;  %v1347_v2 = vld [vmem:[%s2837_s4 + $0xd8] sm:$0xff] }
 0x1bf   : > { %v1156_v60 = vrot.slane %v1139_v21, 5  ;;  %v1108_v62 = vrot.slane %v1090_v24, 4  ;;  %v1254_v45 = vrot.slane %v1237_v30, 5  ;;  %v1008_v48 = vsel %vm955_vm3, %v2355_v34, %v1006_v22  ;;  %1391 = vmatpush.msrb.mxu1 %v1332_v57  ;;  %v1363_v34 = vld [vmem:[%s2837_s4 + $0x158] sm:$0xff]  ;;  %v1346_v35 = vld [vmem:[%s2837_s4 + $0xd0] sm:$0xff]  ;;  %v1329_v30 = vld [vmem:[%s2837_s4 + $0x48] sm:$0xff] }
 0x1c0   : > { %v793_v47 = vpop.f32.mrf.mxu3  ;;  %v1009_v0 = vrot.slane %v991_v37, 4  ;;  %1411 = vmatpush.msra.mxu2 %v1348_v56  ;;  %v1091_v8 = vmax.f32 %v2404_v31, %v2406_v32  ;;  %v2474_v9 = vrot.slane %v1285_v50, 5  ;;  %v1330_v11 = vld [vmem:[%s2837_s4 + $0x50] sm:$0xff]  ;;  %v1060_v43 = vrot.slane %v1042_v54, 4  ;;  %v2510_v21 = vld [vmem:[#allocation2 + $0x59] sm:$0x1]  ;;  %1432 = vmatpush.msra.mxu3 %v1363_v34 }
 0x1c1   : > { %v897_v59 = vmax.f32 %v793_v47, %v875_v15  ;;  %v2373_v15 = vld [vmem:[#allocation2 + $0x4a] sm:$0x1]  ;;  %v2425_v47 = vsel %vm955_vm3, %v2304_v49, %v1105_v40  ;;  %v1058_v49 = vrot.slane %v1041_v13, 5  ;;  %v2485_v12 = vld [vmem:[#allocation2 + $0x54] sm:$0x1]  ;;  %v1238_v10 = vmax.f32 %v2416_v38, %v2418_v39  ;;  %1392 = vmatpush.msrb.mxu1 %v1331_v3  ;;  %v1344_v56 = vld [vmem:[%s2837_s4 + $0xc0] sm:$0xff] }
 0x1c2   : > { %v878_v23 = vpop.f32.mrf.mxu0  ;;  %v2449_v61 = vld [vmem:[#allocation2 + $0x66] sm:$0x1]  ;;  %v2451_v42 = vld [vmem:[#allocation2 + $0x67] sm:$0x1]  ;;  %v1188_v63 = vmax.f32 %v2373_v15, %v2389_v25  ;;  %v2487_v40 = vld [vmem:[#allocation2 + $0x55] sm:$0x1]  ;;  %1412 = vmatpush.msra.mxu2 %v1347_v2  ;;  %v2522_v29 = vsel %vm955_vm3, %v1204_v33, %v2392_v26  ;;  %v2538_v26 = vsel %vm955_vm3, %v1156_v60, %v2414_v36  ;;  %v1109_v38 = vsel %vm958_vm4, %v1108_v62, %v2425_v47 }
 0x1c3   : > { %913 = vst.msk [vmem:[#allocation2 + $0x68] sm:$0xff] %vm304_vm0, %v897_v59  ;;  %v954_v59 = vrot.slane %v935_v20, 5  ;;  %v2489_v22 = vld [vmem:[#allocation2 + $0x50] sm:$0x1]  ;;  %v2491_v6 = vld [vmem:[#allocation2 + $0x51] sm:$0x1]  ;;  %v1092_v13 = vmax.f32 %v2449_v61, %v2451_v42  ;;  %v1059_v18 = vsel %vm955_vm3, %v1058_v49, %v2378_v17  ;;  %v2543_v39 = vsel %vm958_vm4, %v1009_v0, %v1008_v48  ;;  %1393 = vmatpush.msrb.mxu1 %v1330_v11 }
 0x1c4   : > { %v2499_v15 = vld [vmem:[#allocation2 + $0x5b] sm:$0x1]  ;;  %v1362_v16 = vld [vmem:[%s2837_s4 + $0x150] sm:$0xff]  ;;  %v2508_v20 = vld [vmem:[#allocation2 + $0x58] sm:$0x1]  ;;  %v2524_v17 = vrot.slane %v1188_v63, 4  ;;  %1413 = vmatpush.msra.mxu2 %v1346_v35  ;;  %v2558_v47 = vsel %vm955_vm3, %v1254_v45, %v2421_v44  ;;  %v2571_v44 = vsel %vm958_vm4, %v1060_v43, %v1059_v18  ;;  %v1043_v45 = vmax.f32 %v2485_v12, %v2487_v40 }
 0x1c5   : > { %v956_v19 = vsel %vm955_vm3, %v954_v59, %v2396_v27  ;;  %v2514_v24 = vld [vmem:[#allocation2 + $0x5d] sm:$0x1]  ;;  %v2516_v25 = vld [vmem:[#allocation2 + $0x62] sm:$0x1]  ;;  %v2518_v28 = vld [vmem:[#allocation2 + $0x63] sm:$0x1]  ;;  %1433 = vmatpush.msra.mxu3 %v1362_v16  ;;  %1394 = vmatpush.msrb.mxu1 %v1329_v30  ;;  %v1189_v2 = vmax.f32 %v2497_v14, %v2499_v15 }
 0x1c6   : > { %v1345_v27 = vld [vmem:[%s2837_s4 + $0xc8] sm:$0xff]  ;;  %v2532_v31 = vld [vmem:[#allocation2 + $0x64] sm:$0x1]  ;;  %v2534_v32 = vld [vmem:[#allocation2 + $0x65] sm:$0x1]  ;;  %v957_v37 = vrot.slane %v936_v1, 4  ;;  %v993_v11 = vmax.f32 %v2516_v25, %v2518_v28 }
 0x1c7   : > { %v1361_v50 = vld [vmem:[%s2837_s4 + $0x148] sm:$0xff]  ;;  %v2550_v41 = vld [vmem:[#allocation2 + $0x60] sm:$0x1]  ;;  %v2552_v51 = vld [vmem:[#allocation2 + $0x61] sm:$0x1]  ;;  %v2554_v36 = vrot.slane %v1140_v4, 4  ;;  %1414 = vmatpush.msra.mxu2 %v1345_v27  ;;  %v1141_v4 = vmax.f32 %v2508_v20, %v2510_v21  ;;  %v1044_v40 = vmax.f32 %v2532_v31, %v2534_v32 }
 0x1c8   : > { %v796_v46 = vpop.f32.mrf.mxu3  ;;  %v1110_v49 = vrot.slane %v1091_v8, 3  ;;  %v1328_v57 = vld [vmem:[%s2837_s4 + $0x40] sm:$0xff]  ;;  %v2573_v58 = vrot.slane %v1238_v10, 4  ;;  %v1112_v60 = vrot.slane %v1092_v13, 2  ;;  %v2575_v61 = vld [vmem:[#allocation2 + $0x4e] sm:$0x1]  ;;  %1434 = vmatpush.msra.mxu3 %v1361_v50  ;;  %v2595_v3 = vsel %vm958_vm4, %v957_v37, %v956_v19 }
 0x1c9   : > { %v898_v55 = vmax.f32 %v796_v46, %v878_v23  ;;  %v2512_v23 = vld [vmem:[#allocation2 + $0x5c] sm:$0x1]  ;;  %v2577_v42 = vld [vmem:[#allocation2 + $0x4f] sm:$0x1]  ;;  %v1360_v62 = vld [vmem:[%s2837_s4 + $0x140] sm:$0xff]  ;;  %1415 = vmatpush.msra.mxu2 %v1344_v56  ;;  %1395 = vmatpush.msrb.mxu1 %v1328_v57  ;;  %v938_v14 = vmax.f32 %v2550_v41, %v2552_v51  ;;  %v1062_v20 = vrot.slane %v1043_v45, 3 }
 0x1ca   : > { %v2545_v46 = vld [vmem:[#allocation2 + $0x6a] sm:$0x1]  ;;  %v881_v53 = vpop.f32.mrf.mxu0  ;;  %v2562_v33 = vld [vmem:[#allocation2 + $0x6b] sm:$0x1]  ;;  %v1343_v63 = vld [vmem:[%s2837_s4 + $0xb8] sm:$0xff]  ;;  %v1239_v8 = vmax.f32 %v2512_v23, %v2514_v24  ;;  %1435 = vmatpush.msra.mxu3 %v1360_v62  ;;  %v1111_v15 = vsel %vm961_vm5, %v1110_v49, %v1109_v38  ;;  %v1208_v24 = vrot.slane %v1189_v2, 3  ;;  %v1286_v28 = vmax.f32 %v2575_v61, %v2577_v42 }
 0x1cb   : > { %914 = vst.msk [vmem:[#allocation2 + $0x70] sm:$0xff] %vm304_vm0, %v898_v55  ;;  %v992_v55 = vmax.f32 %v2458_v5, %v2460_v7  ;;  %v1327_v1 = vld [vmem:[%s2837_s4 + $0x38] sm:$0xff]  ;;  %v937_v5 = vmax.f32 %v2489_v22, %v2491_v6  ;;  %v1190_v6 = vmax.f32 %v2545_v46, %v2562_v33  ;;  %v1342_v10 = vld [vmem:[%s2837_s4 + $0xb0] sm:$0xff]  ;;  %1416 = vmatpush.msra.mxu2 %v1343_v63  ;;  %v1341_v27 = vld [vmem:[%s2837_s4 + $0xa8] sm:$0xff]  ;;  %v2636_v31 = vrot.slane %v1141_v4, 3 }
 0x1cc   : > { %v1359_v12 = vld [vmem:[%s2837_s4 + $0x138] sm:$0xff]  ;;  %v1326_v13 = vld [vmem:[%s2837_s4 + $0x30] sm:$0xff]  ;;  %1396 = vmatpush.msrb.mxu1 %v1327_v1  ;;  %v1113_v23 = vsel %vm964_vm6, %v1112_v60, %v1111_v15  ;;  %v1325_v30 = vld [vmem:[%s2837_s4 + $0x28] sm:$0xff]  ;;  %v1013_v37 = vrot.slane %v993_v11, 2  ;;  %v963_v60 = vrot.slane %v938_v14, 2 }
 0x1cd   : > { %v1011_v22 = vrot.slane %v992_v55, 3  ;;  %v2620_v18 = vld [vmem:[#allocation2 + $0x5e] sm:$0x1]  ;;  %v1358_v19 = vld [vmem:[%s2837_s4 + $0x130] sm:$0xff]  ;;  %v960_v21 = vrot.slane %v937_v5, 3  ;;  %1436 = vmatpush.msra.mxu3 %v1359_v12  ;;  %1417 = vmatpush.msra.mxu2 %v1342_v10  ;;  %v1357_v50 = vld [vmem:[%s2837_s4 + $0x128] sm:$0xff]  ;;  %v1207_v55 = vsel %vm958_vm4, %v2524_v17, %v2522_v29  ;;  %v1063_v17 = vsel %vm961_vm5, %v1062_v20, %v2571_v44 }
 0x1ce   : > { %v2626_v25 = vld [vmem:[#allocation2 + $0x5f] sm:$0x1]  ;;  %v2639_v38 = vld [vmem:[#allocation2 + $0x6e] sm:$0x1]  ;;  %v2641_v46 = vld [vmem:[#allocation2 + $0x6f] sm:$0x1]  ;;  %1397 = vmatpush.msrb.mxu1 %v1326_v13  ;;  %v1159_v5 = vsel %vm958_vm4, %v2554_v36, %v2538_v26 }
 0x1cf   : > { %v1340_v41 = vld [vmem:[%s2837_s4 + $0xa0] sm:$0xff]  ;;  %v1210_v33 = vrot.slane %v1190_v6, 2  ;;  %1437 = vmatpush.msra.mxu3 %v1358_v19  ;;  %v1339_v57 = vld [vmem:[%s2837_s4 + $0x98] sm:$0xff]  ;;  %v1012_v62 = vsel %vm961_vm5, %v1011_v22, %v2543_v39  ;;  %1418 = vmatpush.msra.mxu2 %v1341_v27  ;;  %v1209_v39 = vsel %vm961_vm5, %v1208_v24, %v1207_v55  ;;  %v1287_v2 = vmax.f32 %v2620_v18, %v2626_v25  ;;  %v1322_v44 = vld [vmem:[%s2837_s4 + $0x10] sm:$0xff] }
 0x1d0   : > { %v799_v54 = vpop.f32.mrf.mxu3  ;;  %v1324_v51 = vld [vmem:[%s2837_s4 + $0x20] sm:$0xff]  ;;  %1398 = vmatpush.msrb.mxu1 %v1325_v30  ;;  %v1355_v29 = vld [vmem:[%s2837_s4 + $0x118] sm:$0xff]  ;;  %v1014_v26 = vsel %vm964_vm6, %v1013_v37, %v1012_v62  ;;  %v1126_v12 = vld [vmem:[#allocation2 + $0x68] sm:$0x1] }
 0x1d1   : > { %v899_v59 = vmax.f32 %v799_v54, %v881_v53  ;;  %v1064_v53 = vrot.slane %v1044_v40, 2  ;;  %v2652_v54 = vrot.slane %v1239_v8, 3  ;;  %v1356_v56 = vld [vmem:[%s2837_s4 + $0x120] sm:$0xff]  ;;  %1438 = vmatpush.msra.mxu3 %v1357_v50  ;;  %v962_v8 = vsel %vm961_vm5, %v960_v21, %v2595_v3  ;;  %1419 = vmatpush.msra.mxu2 %v1340_v41  ;;  %v1134_v10 = vld [vmem:[#allocation2 + $0x69] sm:$0x1]  ;;  %v1354_v24 = vld [vmem:[%s2837_s4 + $0x110] sm:$0xff] }
 0x1d2   : > { %v1077_v7 = vld [vmem:[#allocation2 + $0x76] sm:$0x1]  ;;  %v1085_v48 = vld [vmem:[#allocation2 + $0x77] sm:$0x1]  ;;  %v978_v0 = vld [vmem:[#allocation2 + $0x72] sm:$0x1]  ;;  %1399 = vmatpush.msrb.mxu1 %v1324_v51  ;;  %v1288_v40 = vmax.f32 %v2639_v38, %v2641_v46  ;;  %v965_v3 = vsel %vm964_vm6, %v963_v60, %v962_v8  ;;  %v1211_v15 = vsel %vm964_vm6, %v1210_v33, %v1209_v39  ;;  %v1142_v19 = vmax.f32 %v1126_v12, %v1134_v10 }
 0x1d3   : > { %915 = vst.msk [vmem:[#allocation2 + $0x78] sm:$0xff] %vm304_vm0, %v899_v59  ;;  %v1093_v34 = vmax.f32 %v1077_v7, %v1085_v48  ;;  %v986_v35 = vld [vmem:[#allocation2 + $0x73] sm:$0x1]  ;;  %v1323_v59 = vld [vmem:[%s2837_s4 + $0x18] sm:$0xff]  ;;  %v1029_v63 = vld [vmem:[#allocation2 + $0x74] sm:$0x1]  ;;  %1439 = vmatpush.msra.mxu3 %v1356_v56  ;;  %1420 = vmatpush.msra.mxu2 %v1339_v57 }
 0x1d4   : > { %v994_v43 = vmax.f32 %v978_v0, %v986_v35  ;;  %v1037_v1 = vld [vmem:[#allocation2 + $0x75] sm:$0x1]  ;;  %v923_v45 = vld [vmem:[#allocation2 + $0x70] sm:$0x1]  ;;  %v1065_v35 = vsel %vm964_vm6, %v1064_v53, %v1063_v17  ;;  %v931_v11 = vld [vmem:[#allocation2 + $0x71] sm:$0x1]  ;;  %1400 = vmatpush.msrb.mxu1 %v1323_v59  ;;  %v1257_v59 = vsel %vm958_vm4, %v2573_v58, %v2558_v47 }
 0x1d5   : > { %v1114_v16 = vrot.slane %v1093_v34, 1  ;;  %v1045_v4 = vmax.f32 %v1029_v63, %v1037_v1  ;;  %v939_v6 = vmax.f32 %v923_v45, %v931_v11  ;;  %v1321_v18 = vld [vmem:[%s2837_s4 + $0x8] sm:$0xff]  ;;  %1440 = vmatpush.msra.mxu3 %v1355_v29  ;;  %v1304_v46 = vrot.slane %v1286_v28, 4  ;;  %v1320_v61 = vld [vmem:[%s2837_s4] sm:$0xff]  ;;  %v1383_v56 = vld [vmem:[%s2837_s4 + $0x1f8] sm:$0xff] }
 0x1d6   : > { %v1015_v49 = vrot.slane %v994_v43, 1  ;;  %v1338_v43 = vld [vmem:[%s2837_s4 + $0x90] sm:$0xff]  ;;  %v1224_v21 = vld [vmem:[#allocation2 + $0x6c] sm:$0x1]  ;;  %v1232_v37 = vld [vmem:[#allocation2 + $0x6d] sm:$0x1]  ;;  %1401 = vmatpush.msrb.mxu1 %v1322_v44  ;;  %v1161_v28 = vsel %vm961_vm5, %v2636_v31, %v1159_v5  ;;  %v1259_v29 = vsel %vm961_vm5, %v2652_v54, %v1257_v59  ;;  %v1303_v63 = vsel %vm955_vm3, %v2474_v9, %v2411_v52 }
 0x1d7   : > { %v1115_v32 = vsel %vm967_vm7, %v1114_v16, %v1113_v23  ;;  %v1066_v22 = vrot.slane %v1045_v4, 1  ;;  %v966_v27 = vrot.slane %v939_v6, 1  ;;  %1421 = vmatpush.msra.mxu2 %v1338_v43  ;;  %v1337_v50 = vld [vmem:[%s2837_s4 + $0x88] sm:$0xff]  ;;  %v1162_v41 = vrot.slane %v1142_v19, 2  ;;  %1441 = vmatpush.msra.mxu3 %v1354_v24  ;;  %v1382_v45 = vld [vmem:[%s2837_s4 + $0x1f0] sm:$0xff]  ;;  %v1336_v44 = vld [vmem:[%s2837_s4 + $0x80] sm:$0xff] }
 0x1d8   : > { %1116 = vrot.lane.b32.xlu0 %v1115_v32, %s1758_s29  ;;  %v1016_v14 = vsel %vm967_vm7, %v1015_v49, %v1014_v26  ;;  %v1240_v53 = vmax.f32 %v1224_v21, %v1232_v37  ;;  %v1306_v33 = vrot.slane %v1287_v2, 3  ;;  %1402 = vmatpush.msrb.mxu1 %v1321_v18  ;;  %v1308_v62 = vrot.slane %v1288_v40, 2  ;;  %v1381_v52 = vld [vmem:[%s2837_s4 + $0x1e8] sm:$0xff]  ;;  %v1378_v2 = vld [vmem:[%s2837_s4 + $0x1d0] sm:$0xff]  ;;  %v1376_v8 = vld [vmem:[%s2837_s4 + $0x1c0] sm:$0xff] }
 0x1d9   : > { %v1067_v25 = vsel %vm967_vm7, %v1066_v22, %v1065_v35  ;;  %v968_v42 = vsel %vm967_vm7, %v966_v27, %v965_v3  ;;  %v1163_v57 = vsel %vm964_vm6, %v1162_v41, %v1161_v28  ;;  %1422 = vmatpush.msra.mxu2 %v1337_v50  ;;  %v1305_v58 = vsel %vm958_vm4, %v1304_v46, %v1303_v63  ;;  %v1353_v39 = vld [vmem:[%s2837_s4 + $0x108] sm:$0xff]  ;;  %v1352_v26 = vld [vmem:[%s2837_s4 + $0x100] sm:$0xff]  ;;  %v1371_v12 = vld [vmem:[%s2837_s4 + $0x198] sm:$0xff] }
 0x1da   : > { %v1175_v7 = vld [vmem:[#allocation2 + $0x7a] sm:$0x1]  ;;  %v1183_v48 = vld [vmem:[#allocation2 + $0x7b] sm:$0x1]  ;;  %v2678_v0 = vld [vmem:[#allocation2 + $0x7e] sm:$0x1]  ;;  %1403 = vmatpush.msrb.mxu1 %v1320_v61  ;;  %v1307_v5 = vsel %vm961_vm5, %v1306_v33, %v1305_v58  ;;  %1442 = vmatpush.msra.mxu3 %v1353_v39 }
 0x1db   : > { %v1191_v36 = vmax.f32 %v1175_v7, %v1183_v48  ;;  %v1281_v34 = vld [vmem:[#allocation2 + $0x7f] sm:$0x1]  ;;  %v1127_v13 = vld [vmem:[#allocation2 + $0x78] sm:$0x1]  ;;  %v1135_v20 = vld [vmem:[#allocation2 + $0x79] sm:$0x1]  ;;  %v1309_v9 = vsel %vm964_vm6, %v1308_v62, %v1307_v5  ;;  %1423 = vmatpush.msra.mxu2 %v1336_v44 }
 0x1dc   : > { %v1289_v23 = vmax.f32 %v2678_v0, %v1281_v34  ;;  %v1143_v30 = vmax.f32 %v1127_v13, %v1135_v20  ;;  %v1225_v32 = vld [vmem:[#allocation2 + $0x7c] sm:$0x1]  ;;  %1069 = vst.msk [vmem:[#allocation3 + $0x8] sm:$0xff] %vm304_vm0, %v1067_v25  ;;  %v1233_v51 = vld [vmem:[#allocation2 + $0x7d] sm:$0x1]  ;;  %v1260_v60 = vrot.slane %v1240_v53, 2  ;;  %1448 = vmatpush.msra.mxu1 %v1383_v56  ;;  %1443 = vmatpush.msra.mxu3 %v1352_v26 }
 0x1dd   : > { %v1212_v16 = vrot.slane %v1191_v36, 1  ;;  %v1241_v55 = vmax.f32 %v1225_v32, %v1233_v51  ;;  %970 = vst.msk [vmem:[#allocation3] sm:$0xff] %vm304_vm0, %v968_v42  ;;  %v1380_v48 = vld [vmem:[%s2837_s4 + $0x1e0] sm:$0xff]  ;;  %v1379_v0 = vld [vmem:[%s2837_s4 + $0x1d8] sm:$0xff]  ;;  %v1377_v4 = vld [vmem:[%s2837_s4 + $0x1c8] sm:$0xff] }
 0x1de   : > { %v1164_v49 = vrot.slane %v1143_v30, 1  ;;  %v1310_v1 = vrot.slane %v1289_v23, 1  ;;  %v1261_v47 = vsel %vm964_vm6, %v1260_v60, %v1259_v29  ;;  %1449 = vmatpush.msra.mxu1 %v1382_v45  ;;  %v1375_v36 = vld [vmem:[%s2837_s4 + $0x1b8] sm:$0xff]  ;;  %v1374_v34 = vld [vmem:[%s2837_s4 + $0x1b0] sm:$0xff]  ;;  %v1373_v35 = vld [vmem:[%s2837_s4 + $0x1a8] sm:$0xff] }
 0x1df   : > { %v1213_v38 = vsel %vm967_vm7, %v1212_v16, %v1211_v15  ;;  %v1262_v17 = vrot.slane %v1241_v55, 1  ;;  %v1372_v11 = vld [vmem:[%s2837_s4 + $0x1a0] sm:$0xff]  ;;  %v1370_v40 = vld [vmem:[%s2837_s4 + $0x190] sm:$0xff]  ;;  %v1369_v43 = vld [vmem:[%s2837_s4 + $0x188] sm:$0xff] }
 0x1e0   : > { %1017 = vrot.lane.b32.xlu0 %v1016_v14, %s1758_s29  ;;  %1214 = vrot.lane.b32.xlu1 %v1213_v38, %s1758_s29  ;;  %v1165_v31 = vsel %vm967_vm7, %v1164_v49, %v1163_v57  ;;  %v1311_v7 = vsel %vm967_vm7, %v1310_v1, %v1309_v9  ;;  %v1368_v22 = vld [vmem:[%s2837_s4 + $0x180] sm:$0xff] }
 0x1e1   : > { %1167 = vst.msk [vmem:[#allocation3 + $0x10] sm:$0xff] %vm304_vm0, %v1165_v31  ;;  %v1263_v54 = vsel %vm967_vm7, %v1262_v17, %v1261_v47  ;;  %1450 = vmatpush.msra.mxu1 %v1381_v52  ;;  %v1693_v19 = vld [vmem:[%s2838_s5] ss:$0 sm:$0xff] }
 0x1e2   : > { %1265 = vst.msk [vmem:[#allocation3 + $0x18] sm:$0xff] %vm304_vm0, %v1263_v54 }
 0x1e3   : > { %1451 = vmatpush.msra.mxu1 %v1380_v48 }
 0x1e5   : > { %1452 = vmatpush.msra.mxu1 %v1379_v0 }
 0x1e7   : > { %1453 = vmatpush.msra.mxu1 %v1378_v2 }
 0x1e8   : > { %1312 = vrot.lane.b32.xlu1 %v1311_v7, %s1758_s29  ;;  %s1482_s29 = sshll.u32 %s247_s16, 4  ;;  %s1483_s29 = int_to_ptr.vmem [resolvable:$true] %s1482_s29 }
 0x1e9   : > { %1454 = vmatpush.msra.mxu1 %v1377_v4 }
 0x1eb   : > { %1455 = vmatpush.msra.mxu1 %v1376_v8 }
 0x1ed   : > { %1456 = vmatpush.msra.mxu1 %v1375_v36 }
 0x1ef   : > { %1457 = vmatpush.msra.mxu1 %v1374_v34 }
 0x1f1   : > { %1458 = vmatpush.msra.mxu1 %v1373_v35 }
 0x1f3   : > { %1459 = vmatpush.msra.mxu1 %v1372_v11 }
 0x1f5   : > { %1460 = vmatpush.msra.mxu1 %v1371_v12 }
 0x1f7   : > { %1461 = vmatpush.msra.mxu1 %v1370_v40 }
 0x1f9   : > { %1462 = vmatpush.msra.mxu1 %v1369_v43 }
 0x1fb   : > { %1463 = vmatpush.msra.mxu1 %v1368_v22 }
 0x24a   : > { %v1117_v3 = vpop.permute.xlu0 %1116 }
 0x24b   : > { %1119 = vst.msk [vmem:[#allocation3 + $0x8] sm:$0xff] %vm1020_vm8, %v1117_v3 }
 0x252   : > { %v1018_v6 = vpop.permute.xlu0 %1017  ;;  %v1215_v10 = vpop.permute.xlu1 %1214  ;;  %v1317_v13 = vld [vmem:[#allocation3 + $0x8] sm:$0xff] }
 0x253   : > { %1021 = vst.msk [vmem:[#allocation3] sm:$0xff] %vm1020_vm8, %v1018_v6  ;;  %1424 = vmatmul.f32.vlgmr.msra.gmra.mxu2 %v1317_v13 }
 0x254   : > { %1217 = vst.msk [vmem:[#allocation3 + $0x10] sm:$0xff] %vm1020_vm8, %v1215_v10 }
 0x25a   : > { %v1313_v14 = vpop.permute.xlu1 %1312  ;;  %v1316_v15 = vld [vmem:[#allocation3] sm:$0xff] }
 0x25b   : > { %1315 = vst.msk [vmem:[#allocation3 + $0x18] sm:$0xff] %vm1020_vm8, %v1313_v14  ;;  %1404 = vmatmul.f32.vlgmr.msrb.gmra.mxu1 %v1316_v15  ;;  %v1318_v16 = vld [vmem:[#allocation3 + $0x10] sm:$0xff] }
 0x25c   : > { %1444 = vmatmul.f32.vlgmr.msra.gmra.mxu3 %v1318_v16 }
 0x262   : > { %v1319_v18 = vld [vmem:[#allocation3 + $0x18] sm:$0xff] }
 0x263   : > { %1464 = vmatmul.f32.vlgmr.msra.gmra.mxu1 %v1319_v18 }
 0x2d6   : > { %v1425_v23 = vpop.f32.mrf.mxu2 }
 0x2d8   : > { %v1405_v20 = vpop.f32.mrf.mxu1 }
 0x2d9   : > { %v1406_v21 = vadd.f32 %v1693_v19, %v1405_v20 }
 0x2db   : > { %v1426_v24 = vadd.f32 %v1425_v23, %v1406_v21 }
 0x2df   : > { %v1445_v25 = vpop.f32.mrf.mxu3 }
 0x2e0   : > { %v1446_v27 = vadd.f32 %v1445_v25, %v1426_v24  ;;  %v1465_v30 = vpop.f32.mrf.mxu1 }
 0x2e2   : > { %v1466_v32 = vadd.f32 %v1465_v30, %v1446_v27 }
 0x2e4   : > { %1468 = vst [vmem:[%s247_s16] sm:$0xff] %v1466_v32 }
 0x2e5   : > { %1721 = shalt.err (!%p1718_p3)
}
 0x2e6   : > { %1652 = dma.vmem_to_hbm [thread:$0]  (%p1829_p5), %s1483_s29, 128, %s1485_s18, %s1470_s19  }
 0x2e7 PF: > { %p1658_p4 = scmp.ge.s32.totalorder %s1756_s24, 2  ;;  %s1496_s12 = sand.u32 1, %s1744_s21  }
 0x2e8   : > { %s1497_s13 = scalar_lea.sflag [#allocation5], %s1496_s12 }
 0x2e9   : > { %p1655_p7 = pnand %p1658_p4, %p1833_p6 }
 0x2eb   : > { %p1656_p8 = pneg %p1655_p7 }
 0x2ed   : > { %1739 = dma.done.wait (%p1656_p8), %s1497_s13, 128  }
 0x2ee   : > { %1741 = vsyncadd (%p1656_p8), %s1497_s13, 4294967168  ;;  %p16_p9 = scmp.ge.s32.totalorder %s1817_s27, 4   ;;  %s2842_s21 = smov %s1748_s22 }
 0x2ef   : > { %s2843_s22 = smov %s1752_s23  ;;  %s2844_s23 = smov %s1827_s30 }
 0x2f0   : > { %s2845_s24 = smov %s1817_s27  ;;  %18 = sbr.rel (!%p16_p9) target bundleno = 3 (0x3), region = 82 }
 0x2f5   :  { %1503 = vsyncpa [#allocation5], 1 }
 0x2f6   :  { %1505 = vsyncpa [#allocation5 + $0x1], 1 }

</bundles_post_ra>
